<compile_context>
chip_gen: v7x
topology: tpu7x:2x2x1
jax: 0.10.0
libtpu: 0.0.40
codegen_flags: <defaults>
</compile_context>

<pallas_src>
import functools

import jax
import jax.numpy as jnp
from jax.experimental import pallas as pl
from jax.experimental.pallas import tpu as pltpu


# ------------------------------ Pallas kernel -------------------------------

def _bilstm_kernel(xin_ref, w_in_ref, b_ref, w_hh_ref, out_ref, h_sc, c_sc, *,
                   unroll):
    """Fused (input-projection + bidirectional LSTM recurrence).

    xin_ref : [T, Bt, 2D] bf16  cols 0:D = x(t) (fwd stream), D:2D = x(T-1-t) (bwd stream)
    w_in_ref: [2D, 8H]    bf16  block-structured input weights
    b_ref   : [1, 8H]     f32   combined biases (b_ih + b_hh, both directions)
    w_hh_ref: [2H, 8H]    bf16  block-diagonal recurrent weights
    out_ref : [T, Bt, 2H] f32   out[t,:,0:H] = h_fwd(t); out[t,:,H:2H] = h_bwd(T-1-t)

    Gate-column layout (8H = 128 lanes): [ i_f i_b | f_f f_b | o_f o_b | g_f g_b ]
    so sigmoid gates are the first 3*2H lanes and tanh gate is the last 2H lanes.
    """
    T = xin_ref.shape[0]
    G = w_in_ref.shape[1]
    H2 = G // 4            # 2H (fwd|bwd hidden width)

    h_sc[...] = jnp.zeros_like(h_sc)
    c_sc[...] = jnp.zeros_like(c_sc)

    w_in = w_in_ref[...]
    w_hh = w_hh_ref[...]
    bias = b_ref[...]

    def step(s, carry):
        # Input projection: independent of h/c -> scheduler hoists it off the
        # serial dependency chain under the bounded unroll.
        xg = jnp.dot(xin_ref[s], w_in, preferred_element_type=jnp.float32)
        hg = jnp.dot(h_sc[...].astype(w_hh.dtype), w_hh,
                     preferred_element_type=jnp.float32)
        gates = xg + hg + bias                       # [Bt, 8H] f32
        sg = jax.nn.sigmoid(gates[:, 0:3 * H2])      # i|f|o in one EUP region
        g = jnp.tanh(gates[:, 3 * H2:4 * H2])
        i = sg[:, 0:H2]
        f = sg[:, H2:2 * H2]
        o = sg[:, 2 * H2:3 * H2]
        c = f * c_sc[...] + i * g
        h = o * jnp.tanh(c)
        c_sc[...] = c
        h_sc[...] = h
        out_ref[s] = h                               # one combined [Bt, 2H] store
        return carry

    jax.lax.fori_loop(0, T, step, 0, unroll=unroll)


def bilstm_forward(xin, w_in, bias, w_hh, *, batch_tile=8, unroll=8,
                   vmem_limit_bytes=32 * 1024 * 1024):
    """xin: [T, B, 2D] bf16 merged embedding stream -> [T, B, 2H] f32.

    Batch is chunked on a "parallel" grid axis so v7x's two TensorCores split
    independent batch chunks (h/c scratch is re-initialized per grid step).
    NOTE: a partial last batch chunk relies on Pallas block padding: padded
    rows compute garbage but never interact with valid rows and are never
    written back to valid output rows.
    """
    T, B, D2 = xin.shape
    G = w_in.shape[1]
    H2 = G // 4
    bt = min(batch_tile, B)
    nb = pl.cdiv(B, bt)
    kernel = functools.partial(_bilstm_kernel, unroll=min(unroll, T))
    return pl.pallas_call(
        kernel,
        out_shape=jax.ShapeDtypeStruct((T, B, H2), jnp.float32),
        grid=(nb,),
        in_specs=[
            pl.BlockSpec((T, bt, D2), lambda i: (0, i, 0)),
            pl.BlockSpec((D2, G), lambda i: (0, 0)),
            pl.BlockSpec((1, G), lambda i: (0, 0)),
            pl.BlockSpec((H2, G), lambda i: (0, 0)),
        ],
        out_specs=pl.BlockSpec((T, bt, H2), lambda i: (0, i, 0)),
        scratch_shapes=[
            pltpu.VMEM((bt, H2), jnp.float32),   # h state (fwd | bwd)
            pltpu.VMEM((bt, H2), jnp.float32),   # c state (fwd | bwd)
        ],
        compiler_params=pltpu.CompilerParams(
            dimension_semantics=("parallel",),
            vmem_limit_bytes=vmem_limit_bytes,
        ),
    )(xin, w_in, bias, w_hh)


# --------------------------- parameter fusion glue ---------------------------

def prepare_params(params, mxu_dtype=jnp.bfloat16):
    """One-time parameter fusion (would be done offline / at load time).

    Builds:
      w_in  [2D, 8H]: rows 0:D feed the forward sub-columns, rows D:2D the
                      backward sub-columns (matching the merged input layout)
      w_hh  [2H, 8H]: block-diagonal recurrent weights in the same column layout
      bias  [1, 8H]
      emb_table bf16
    Gate order is reordered torch (i,f,g,o) -> (i,f,o,g); within each 2H-wide
    gate block the first H columns are forward, the last H backward.
    """
    pf, pb = params["fwd"], params["bwd"]
    H = pf["w_hh"].shape[0]
    D = pf["w_ih"].shape[0]
    perm = (0, 1, 3, 2)     # torch (i,f,g,o) -> (i,f,o,g)

    def interleave(af, ab):   # two [..., 4H] (torch order) -> [..., 8H]
        blocks = []
        for k in perm:
            blocks.append(af[..., k * H:(k + 1) * H])
            blocks.append(ab[..., k * H:(k + 1) * H])
        return jnp.concatenate(blocks, axis=-1)

    zD = jnp.zeros((D, 4 * H), jnp.float32)
    zH = jnp.zeros((H, 4 * H), jnp.float32)
    w_in = jnp.concatenate([interleave(pf["w_ih"], zD),
                            interleave(zD, pb["w_ih"])], axis=0).astype(mxu_dtype)
    w_hh = jnp.concatenate([interleave(pf["w_hh"], zH),
                            interleave(zH, pb["w_hh"])], axis=0).astype(mxu_dtype)
    bias = interleave(pf["b_ih"] + pf["b_hh"],
                      pb["b_ih"] + pb["b_hh"]).astype(jnp.float32).reshape(1, -1)
    return {
        "emb_table": params["emb_table"].astype(jnp.bfloat16),
        "w_in": w_in,
        "w_hh": w_hh,
        "bias": bias,
        "H": H,
    }


# ------------------------------ module forward ------------------------------

def graph_embedding_initialization(token_ids, fused):
    """token_ids: [B, N] int32 -> batch node_feat [B, N, hidden_size]."""
    emb = fused["emb_table"]
    H = fused["H"]
    B, N = token_ids.shape
    D = emb.shape[1]

    # 1) w2v lookup, gathered directly into the time-major MERGED layout the
    #    kernel wants (one gather, bf16, no cast/transpose passes):
    #      xin[t, b, 0:D]  = emb[ids[b, t]]        (forward-time stream)
    #      xin[t, b, D:2D] = emb[ids[b, N-1-t]]    (reverse-time stream)
    #    (data-dependent gather has no rectangular BlockSpec; kept in XLA glue)
    ids_tm = token_ids.T                                      # [N, B]
    ids2 = jnp.stack([ids_tm, ids_tm[::-1]], axis=-1)         # [N, B, 2]
    xin = jnp.take(emb, ids2, axis=0).reshape(N, B, 2 * D)    # [N, B, 2D] bf16

    # 2) word dropout: no-op in eval mode

    # 3) fused BiLSTM: projection + recurrence in one kernel, no xp round trip
    out_tm = bilstm_forward(xin, fused["w_in"], fused["bias"], fused["w_hh"])

    # 4) single fused relayout pass: un-reverse the backward half along time and
    #    go [N, B, 2H] -> [B, N, 2H]. Kept in XLA (one pass) because writing
    #    [B, N, 2H] directly from the kernel would need B-way split per-step
    #    stores, which is worse than one extra vectorized relayout.
    # TODO(synk): pack_padded_sequence variable-length graphs not handled;
    # assumes all graphs in the batch have the same number of nodes.
    # TODO(synk): production batches should pack/pad to >=8 graphs per
    # recurrence invocation to fill vreg sublanes.
    fwd = out_tm[:, :, :H]
    bwd = out_tm[::-1, :, H:]
    return jnp.transpose(jnp.concatenate([fwd, bwd], axis=-1), (1, 0, 2))


# ------------------------------ params / check ------------------------------

def init_params(key, vocab_size, emb_dim, hidden_size):
    H = hidden_size // 2
    keys = jax.random.split(key, 9)
    k = 1.0 / jnp.sqrt(jnp.float32(H))

    def u(kk, shape):
        return jax.random.uniform(kk, shape, jnp.float32, -k, k)

    def direction(ks):
        return {
            "w_ih": u(ks[0], (emb_dim, 4 * H)),   # == torch weight_ih^T (i,f,g,o)
            "w_hh": u(ks[1], (H, 4 * H)),         # == torch weight_hh^T
            "b_ih": u(ks[2], (4 * H,)),
            "b_hh": u(ks[3], (4 * H,)),
        }

    return {
        "emb_table": 0.1 * jax.random.normal(keys[0], (vocab_size, emb_dim), jnp.float32),
        "fwd": direction(keys[1:5]),
        "bwd": direction(keys[5:9]),
    }


def _ref_lstm_dir(x_tm, p):
    H = p["w_hh"].shape[0]

    def step(carry, xt):
        h, c = carry
        gates = xt @ p["w_ih"] + p["b_ih"] + p["b_hh"] + h @ p["w_hh"]
        i = jax.nn.sigmoid(gates[:, :H])
        f = jax.nn.sigmoid(gates[:, H:2 * H])
        g = jnp.tanh(gates[:, 2 * H:3 * H])
        o = jax.nn.sigmoid(gates[:, 3 * H:])
        c = f * c + i * g
        h = o * jnp.tanh(c)
        return (h, c), h

    B = x_tm.shape[1]
    init = (jnp.zeros((B, H), jnp.float32), jnp.zeros((B, H), jnp.float32))
    _, hs = jax.lax.scan(step, init, x_tm)
    return hs


if __name__ == "__main__":
    B, N, D, hidden_size, vocab = 2, 8, 32, 32, 100
    key = jax.random.PRNGKey(0)
    kp, kt = jax.random.split(key)
    params = init_params(kp, vocab, D, hidden_size)
    fused = prepare_params(params)
    token_ids = jax.random.randint(kt, (B, N), 0, vocab)

    out = graph_embedding_initialization(token_ids, fused)
    out = jax.block_until_ready(out)
    assert out.shape == (B, N, hidden_size)

    # pure-JAX f32 reference (kernel matmul operands run in bf16 on the MXU,
    # f32 accumulation -> loosened tolerance)
    emb = jnp.take(params["emb_table"], token_ids, axis=0)
    x_tm = jnp.transpose(emb, (1, 0, 2))
    ref_f = _ref_lstm_dir(x_tm, params["fwd"])
    ref_b = _ref_lstm_dir(x_tm[::-1], params["bwd"])[::-1]
    ref = jnp.transpose(jnp.concatenate([ref_f, ref_b], axis=-1), (1, 0, 2))
    assert jnp.allclose(out, ref, atol=2e-2, rtol=2e-2), float(jnp.max(jnp.abs(out - ref)))

    print("KERNEL_OK")
</pallas_src>

<mosaic_0001>
module attributes {stable_mosaic.version = 11 : i64} {
  func.func @_bilstm_kernel(%arg0: i32, %arg1: memref<8x2x64xbf16, #tpu.memory_space<vmem>>, %arg2: memref<64x128xbf16, #tpu.memory_space<vmem>>, %arg3: memref<1x128xf32, #tpu.memory_space<vmem>>, %arg4: memref<32x128xbf16, #tpu.memory_space<vmem>>, %arg5: memref<8x2x32xf32, #tpu.memory_space<vmem>>, %arg6: memref<2x32xf32, #tpu.memory_space<vmem>>, %arg7: memref<2x32xf32, #tpu.memory_space<vmem>>) attributes {dimension_semantics = [#tpu.dimension_semantics<parallel>], iteration_bounds = array<i64: 1>, scalar_prefetch = 0 : i64, scratch_operands = 2 : i64, tpu.core_type = #tpu.core_type<tc>, window_params = [{transform_indices = @transform_0, window_bounds = array<i64: 8, 2, 64>}, {pipeline_mode = #tpu.pipeline_mode<synchronous>, transform_indices = @transform_1, window_bounds = array<i64: 64, 128>}, {pipeline_mode = #tpu.pipeline_mode<synchronous>, transform_indices = @transform_2, window_bounds = array<i64: 1, 128>}, {pipeline_mode = #tpu.pipeline_mode<synchronous>, transform_indices = @transform_3, window_bounds = array<i64: 32, 128>}, {transform_indices = @transform_4, window_bounds = array<i64: 8, 2, 32>}]} {
    %cst = arith.constant 0.000000e+00 : f32
    %0 = vector.broadcast %cst : f32 to vector<2x32xf32>
    %c0 = arith.constant 0 : index
    %c0_0 = arith.constant 0 : index
    %1 = vector.load %arg6[%c0, %c0_0] : memref<2x32xf32, #tpu.memory_space<vmem>>, vector<2x32xf32>
    tpu.vector_store %arg6[%c0, %c0_0], %0 {strides = array<i32>} : memref<2x32xf32, #tpu.memory_space<vmem>>, vector<2x32xf32>,
    %cst_1 = arith.constant 0.000000e+00 : f32
    %2 = vector.broadcast %cst_1 : f32 to vector<2x32xf32>
    %c0_2 = arith.constant 0 : index
    %c0_3 = arith.constant 0 : index
    %3 = vector.load %arg7[%c0_2, %c0_3] : memref<2x32xf32, #tpu.memory_space<vmem>>, vector<2x32xf32>
    tpu.vector_store %arg7[%c0_2, %c0_3], %2 {strides = array<i32>} : memref<2x32xf32, #tpu.memory_space<vmem>>, vector<2x32xf32>,
    %c0_4 = arith.constant 0 : index
    %c0_5 = arith.constant 0 : index
    %4 = vector.load %arg2[%c0_4, %c0_5] : memref<64x128xbf16, #tpu.memory_space<vmem>>, vector<64x128xbf16>
    %c0_6 = arith.constant 0 : index
    %c0_7 = arith.constant 0 : index
    %5 = vector.load %arg4[%c0_6, %c0_7] : memref<32x128xbf16, #tpu.memory_space<vmem>>, vector<32x128xbf16>
    %c0_8 = arith.constant 0 : index
    %c0_9 = arith.constant 0 : index
    %6 = vector.load %arg3[%c0_8, %c0_9] : memref<1x128xf32, #tpu.memory_space<vmem>>, vector<1x128xf32>
    %c0_i32 = arith.constant 0 : i32
    %7 = arith.index_cast %c0_i32 : i32 to index
    %c0_10 = arith.constant 0 : index
    %c0_11 = arith.constant 0 : index
    %8 = vector.load %arg1[%7, %c0_10, %c0_11] : memref<8x2x64xbf16, #tpu.memory_space<vmem>>, vector<1x2x64xbf16>
    %9 = vector.shape_cast %8 : vector<1x2x64xbf16> to vector<2x64xbf16>
    %cst_12 = arith.constant dense<0.000000e+00> : vector<2x128xf32>
    %10 = tpu.matmul %9, %4, %cst_12 {dimension_numbers = #tpu.dot_dimension_numbers<[1], [0], [0], [1], [0, 0, 1, 1], [], []>} : vector<2x64xbf16>, vector<64x128xbf16>, vector<2x128xf32> -> vector<2x128xf32>
    %c0_13 = arith.constant 0 : index
    %c0_14 = arith.constant 0 : index
    %11 = vector.load %arg6[%c0_13, %c0_14] : memref<2x32xf32, #tpu.memory_space<vmem>>, vector<2x32xf32>
    %12 = arith.truncf %11 : vector<2x32xf32> to vector<2x32xbf16>
    %cst_15 = arith.constant dense<0.000000e+00> : vector<2x128xf32>
    %13 = tpu.matmul %12, %5, %cst_15 {dimension_numbers = #tpu.dot_dimension_numbers<[1], [0], [0], [1], [0, 0, 1, 1], [], []>} : vector<2x32xbf16>, vector<32x128xbf16>, vector<2x128xf32> -> vector<2x128xf32>
    %14 = arith.addf %10, %13 : vector<2x128xf32>
    %15 = vector.broadcast %6 : vector<1x128xf32> to vector<2x128xf32>
    %16 = arith.addf %14, %15 : vector<2x128xf32>
    %17 = vector.extract_strided_slice %16 {offsets = [0, 0], sizes = [2, 96], strides = [1, 1]} : vector<2x128xf32> to vector<2x96xf32>
    %18 = arith.negf %17 : vector<2x96xf32>
    %19 = math.exp %18 : vector<2x96xf32>
    %cst_16 = arith.constant 1.000000e+00 : f32
    %20 = vector.broadcast %cst_16 : f32 to vector<2x96xf32>
    %21 = arith.addf %20, %19 : vector<2x96xf32>
    %22 = arith.divf %20, %21 : vector<2x96xf32>
    %23 = vector.extract_strided_slice %16 {offsets = [0, 96], sizes = [2, 32], strides = [1, 1]} : vector<2x128xf32> to vector<2x32xf32>
    %24 = math.tanh %23 : vector<2x32xf32>
    %25 = vector.extract_strided_slice %22 {offsets = [0, 0], sizes = [2, 32], strides = [1, 1]} : vector<2x96xf32> to vector<2x32xf32>
    %26 = vector.extract_strided_slice %22 {offsets = [0, 32], sizes = [2, 32], strides = [1, 1]} : vector<2x96xf32> to vector<2x32xf32>
    %27 = vector.extract_strided_slice %22 {offsets = [0, 64], sizes = [2, 32], strides = [1, 1]} : vector<2x96xf32> to vector<2x32xf32>
    %c0_17 = arith.constant 0 : index
    %c0_18 = arith.constant 0 : index
    %28 = vector.load %arg7[%c0_17, %c0_18] : memref<2x32xf32, #tpu.memory_space<vmem>>, vector<2x32xf32>
    %29 = arith.mulf %26, %28 : vector<2x32xf32>
    %30 = arith.mulf %25, %24 : vector<2x32xf32>
    %31 = arith.addf %29, %30 : vector<2x32xf32>
    %32 = math.tanh %31 : vector<2x32xf32>
    %33 = arith.mulf %27, %32 : vector<2x32xf32>
    %c0_19 = arith.constant 0 : index
    %c0_20 = arith.constant 0 : index
    %34 = vector.load %arg7[%c0_19, %c0_20] : memref<2x32xf32, #tpu.memory_space<vmem>>, vector<2x32xf32>
    tpu.vector_store %arg7[%c0_19, %c0_20], %31 {strides = array<i32>} : memref<2x32xf32, #tpu.memory_space<vmem>>, vector<2x32xf32>,
    %c0_21 = arith.constant 0 : index
    %c0_22 = arith.constant 0 : index
    %35 = vector.load %arg6[%c0_21, %c0_22] : memref<2x32xf32, #tpu.memory_space<vmem>>, vector<2x32xf32>
    tpu.vector_store %arg6[%c0_21, %c0_22], %33 {strides = array<i32>} : memref<2x32xf32, #tpu.memory_space<vmem>>, vector<2x32xf32>,
    %36 = arith.index_cast %c0_i32 : i32 to index
    %c0_23 = arith.constant 0 : index
    %c0_24 = arith.constant 0 : index
    %37 = vector.load %arg5[%36, %c0_23, %c0_24] : memref<8x2x32xf32, #tpu.memory_space<vmem>>, vector<1x2x32xf32>
    %38 = vector.shape_cast %37 : vector<1x2x32xf32> to vector<2x32xf32>
    %39 = vector.shape_cast %33 : vector<2x32xf32> to vector<1x2x32xf32>
    tpu.vector_store %arg5[%36, %c0_23, %c0_24], %39 {strides = array<i32>} : memref<8x2x32xf32, #tpu.memory_space<vmem>>, vector<1x2x32xf32>,
    %c1_i32 = arith.constant 1 : i32
    %40 = arith.index_cast %c1_i32 : i32 to index
    %c0_25 = arith.constant 0 : index
    %c0_26 = arith.constant 0 : index
    %41 = vector.load %arg1[%40, %c0_25, %c0_26] : memref<8x2x64xbf16, #tpu.memory_space<vmem>>, vector<1x2x64xbf16>
    %42 = vector.shape_cast %41 : vector<1x2x64xbf16> to vector<2x64xbf16>
    %cst_27 = arith.constant dense<0.000000e+00> : vector<2x128xf32>
    %43 = tpu.matmul %42, %4, %cst_27 {dimension_numbers = #tpu.dot_dimension_numbers<[1], [0], [0], [1], [0, 0, 1, 1], [], []>} : vector<2x64xbf16>, vector<64x128xbf16>, vector<2x128xf32> -> vector<2x128xf32>
    %c0_28 = arith.constant 0 : index
    %c0_29 = arith.constant 0 : index
    %44 = vector.load %arg6[%c0_28, %c0_29] : memref<2x32xf32, #tpu.memory_space<vmem>>, vector<2x32xf32>
    %45 = arith.truncf %44 : vector<2x32xf32> to vector<2x32xbf16>
    %cst_30 = arith.constant dense<0.000000e+00> : vector<2x128xf32>
    %46 = tpu.matmul %45, %5, %cst_30 {dimension_numbers = #tpu.dot_dimension_numbers<[1], [0], [0], [1], [0, 0, 1, 1], [], []>} : vector<2x32xbf16>, vector<32x128xbf16>, vector<2x128xf32> -> vector<2x128xf32>
    %47 = arith.addf %43, %46 : vector<2x128xf32>
    %48 = vector.broadcast %6 : vector<1x128xf32> to vector<2x128xf32>
    %49 = arith.addf %47, %48 : vector<2x128xf32>
    %50 = vector.extract_strided_slice %49 {offsets = [0, 0], sizes = [2, 96], strides = [1, 1]} : vector<2x128xf32> to vector<2x96xf32>
    %51 = arith.negf %50 : vector<2x96xf32>
    %52 = math.exp %51 : vector<2x96xf32>
    %cst_31 = arith.constant 1.000000e+00 : f32
    %53 = vector.broadcast %cst_31 : f32 to vector<2x96xf32>
    %54 = arith.addf %53, %52 : vector<2x96xf32>
    %55 = arith.divf %53, %54 : vector<2x96xf32>
    %56 = vector.extract_strided_slice %49 {offsets = [0, 96], sizes = [2, 32], strides = [1, 1]} : vector<2x128xf32> to vector<2x32xf32>
    %57 = math.tanh %56 : vector<2x32xf32>
    %58 = vector.extract_strided_slice %55 {offsets = [0, 0], sizes = [2, 32], strides = [1, 1]} : vector<2x96xf32> to vector<2x32xf32>
    %59 = vector.extract_strided_slice %55 {offsets = [0, 32], sizes = [2, 32], strides = [1, 1]} : vector<2x96xf32> to vector<2x32xf32>
    %60 = vector.extract_strided_slice %55 {offsets = [0, 64], sizes = [2, 32], strides = [1, 1]} : vector<2x96xf32> to vector<2x32xf32>
    %c0_32 = arith.constant 0 : index
    %c0_33 = arith.constant 0 : index
    %61 = vector.load %arg7[%c0_32, %c0_33] : memref<2x32xf32, #tpu.memory_space<vmem>>, vector<2x32xf32>
    %62 = arith.mulf %59, %61 : vector<2x32xf32>
    %63 = arith.mulf %58, %57 : vector<2x32xf32>
    %64 = arith.addf %62, %63 : vector<2x32xf32>
    %65 = math.tanh %64 : vector<2x32xf32>
    %66 = arith.mulf %60, %65 : vector<2x32xf32>
    %c0_34 = arith.constant 0 : index
    %c0_35 = arith.constant 0 : index
    %67 = vector.load %arg7[%c0_34, %c0_35] : memref<2x32xf32, #tpu.memory_space<vmem>>, vector<2x32xf32>
    tpu.vector_store %arg7[%c0_34, %c0_35], %64 {strides = array<i32>} : memref<2x32xf32, #tpu.memory_space<vmem>>, vector<2x32xf32>,
    %c0_36 = arith.constant 0 : index
    %c0_37 = arith.constant 0 : index
    %68 = vector.load %arg6[%c0_36, %c0_37] : memref<2x32xf32, #tpu.memory_space<vmem>>, vector<2x32xf32>
    tpu.vector_store %arg6[%c0_36, %c0_37], %66 {strides = array<i32>} : memref<2x32xf32, #tpu.memory_space<vmem>>, vector<2x32xf32>,
    %69 = arith.index_cast %c1_i32 : i32 to index
    %c0_38 = arith.constant 0 : index
    %c0_39 = arith.constant 0 : index
    %70 = vector.load %arg5[%69, %c0_38, %c0_39] : memref<8x2x32xf32, #tpu.memory_space<vmem>>, vector<1x2x32xf32>
    %71 = vector.shape_cast %70 : vector<1x2x32xf32> to vector<2x32xf32>
    %72 = vector.shape_cast %66 : vector<2x32xf32> to vector<1x2x32xf32>
    tpu.vector_store %arg5[%69, %c0_38, %c0_39], %72 {strides = array<i32>} : memref<8x2x32xf32, #tpu.memory_space<vmem>>, vector<1x2x32xf32>,
    %c2_i32 = arith.constant 2 : i32
    %73 = arith.index_cast %c2_i32 : i32 to index
    %c0_40 = arith.constant 0 : index
    %c0_41 = arith.constant 0 : index
    %74 = vector.load %arg1[%73, %c0_40, %c0_41] : memref<8x2x64xbf16, #tpu.memory_space<vmem>>, vector<1x2x64xbf16>
    %75 = vector.shape_cast %74 : vector<1x2x64xbf16> to vector<2x64xbf16>
    %cst_42 = arith.constant dense<0.000000e+00> : vector<2x128xf32>
    %76 = tpu.matmul %75, %4, %cst_42 {dimension_numbers = #tpu.dot_dimension_numbers<[1], [0], [0], [1], [0, 0, 1, 1], [], []>} : vector<2x64xbf16>, vector<64x128xbf16>, vector<2x128xf32> -> vector<2x128xf32>
    %c0_43 = arith.constant 0 : index
    %c0_44 = arith.constant 0 : index
    %77 = vector.load %arg6[%c0_43, %c0_44] : memref<2x32xf32, #tpu.memory_space<vmem>>, vector<2x32xf32>
    %78 = arith.truncf %77 : vector<2x32xf32> to vector<2x32xbf16>
    %cst_45 = arith.constant dense<0.000000e+00> : vector<2x128xf32>
    %79 = tpu.matmul %78, %5, %cst_45 {dimension_numbers = #tpu.dot_dimension_numbers<[1], [0], [0], [1], [0, 0, 1, 1], [], []>} : vector<2x32xbf16>, vector<32x128xbf16>, vector<2x128xf32> -> vector<2x128xf32>
    %80 = arith.addf %76, %79 : vector<2x128xf32>
    %81 = vector.broadcast %6 : vector<1x128xf32> to vector<2x128xf32>
    %82 = arith.addf %80, %81 : vector<2x128xf32>
    %83 = vector.extract_strided_slice %82 {offsets = [0, 0], sizes = [2, 96], strides = [1, 1]} : vector<2x128xf32> to vector<2x96xf32>
    %84 = arith.negf %83 : vector<2x96xf32>
    %85 = math.exp %84 : vector<2x96xf32>
    %cst_46 = arith.constant 1.000000e+00 : f32
    %86 = vector.broadcast %cst_46 : f32 to vector<2x96xf32>
    %87 = arith.addf %86, %85 : vector<2x96xf32>
    %88 = arith.divf %86, %87 : vector<2x96xf32>
    %89 = vector.extract_strided_slice %82 {offsets = [0, 96], sizes = [2, 32], strides = [1, 1]} : vector<2x128xf32> to vector<2x32xf32>
    %90 = math.tanh %89 : vector<2x32xf32>
    %91 = vector.extract_strided_slice %88 {offsets = [0, 0], sizes = [2, 32], strides = [1, 1]} : vector<2x96xf32> to vector<2x32xf32>
    %92 = vector.extract_strided_slice %88 {offsets = [0, 32], sizes = [2, 32], strides = [1, 1]} : vector<2x96xf32> to vector<2x32xf32>
    %93 = vector.extract_strided_slice %88 {offsets = [0, 64], sizes = [2, 32], strides = [1, 1]} : vector<2x96xf32> to vector<2x32xf32>
    %c0_47 = arith.constant 0 : index
    %c0_48 = arith.constant 0 : index
    %94 = vector.load %arg7[%c0_47, %c0_48] : memref<2x32xf32, #tpu.memory_space<vmem>>, vector<2x32xf32>
    %95 = arith.mulf %92, %94 : vector<2x32xf32>
    %96 = arith.mulf %91, %90 : vector<2x32xf32>
    %97 = arith.addf %95, %96 : vector<2x32xf32>
    %98 = math.tanh %97 : vector<2x32xf32>
    %99 = arith.mulf %93, %98 : vector<2x32xf32>
    %c0_49 = arith.constant 0 : index
    %c0_50 = arith.constant 0 : index
    %100 = vector.load %arg7[%c0_49, %c0_50] : memref<2x32xf32, #tpu.memory_space<vmem>>, vector<2x32xf32>
    tpu.vector_store %arg7[%c0_49, %c0_50], %97 {strides = array<i32>} : memref<2x32xf32, #tpu.memory_space<vmem>>, vector<2x32xf32>,
    %c0_51 = arith.constant 0 : index
    %c0_52 = arith.constant 0 : index
    %101 = vector.load %arg6[%c0_51, %c0_52] : memref<2x32xf32, #tpu.memory_space<vmem>>, vector<2x32xf32>
    tpu.vector_store %arg6[%c0_51, %c0_52], %99 {strides = array<i32>} : memref<2x32xf32, #tpu.memory_space<vmem>>, vector<2x32xf32>,
    %102 = arith.index_cast %c2_i32 : i32 to index
    %c0_53 = arith.constant 0 : index
    %c0_54 = arith.constant 0 : index
    %103 = vector.load %arg5[%102, %c0_53, %c0_54] : memref<8x2x32xf32, #tpu.memory_space<vmem>>, vector<1x2x32xf32>
    %104 = vector.shape_cast %103 : vector<1x2x32xf32> to vector<2x32xf32>
    %105 = vector.shape_cast %99 : vector<2x32xf32> to vector<1x2x32xf32>
    tpu.vector_store %arg5[%102, %c0_53, %c0_54], %105 {strides = array<i32>} : memref<8x2x32xf32, #tpu.memory_space<vmem>>, vector<1x2x32xf32>,
    %c3_i32 = arith.constant 3 : i32
    %106 = arith.index_cast %c3_i32 : i32 to index
    %c0_55 = arith.constant 0 : index
    %c0_56 = arith.constant 0 : index
    %107 = vector.load %arg1[%106, %c0_55, %c0_56] : memref<8x2x64xbf16, #tpu.memory_space<vmem>>, vector<1x2x64xbf16>
    %108 = vector.shape_cast %107 : vector<1x2x64xbf16> to vector<2x64xbf16>
    %cst_57 = arith.constant dense<0.000000e+00> : vector<2x128xf32>
    %109 = tpu.matmul %108, %4, %cst_57 {dimension_numbers = #tpu.dot_dimension_numbers<[1], [0], [0], [1], [0, 0, 1, 1], [], []>} : vector<2x64xbf16>, vector<64x128xbf16>, vector<2x128xf32> -> vector<2x128xf32>
    %c0_58 = arith.constant 0 : index
    %c0_59 = arith.constant 0 : index
    %110 = vector.load %arg6[%c0_58, %c0_59] : memref<2x32xf32, #tpu.memory_space<vmem>>, vector<2x32xf32>
    %111 = arith.truncf %110 : vector<2x32xf32> to vector<2x32xbf16>
    %cst_60 = arith.constant dense<0.000000e+00> : vector<2x128xf32>
    %112 = tpu.matmul %111, %5, %cst_60 {dimension_numbers = #tpu.dot_dimension_numbers<[1], [0], [0], [1], [0, 0, 1, 1], [], []>} : vector<2x32xbf16>, vector<32x128xbf16>, vector<2x128xf32> -> vector<2x128xf32>
    %113 = arith.addf %109, %112 : vector<2x128xf32>
    %114 = vector.broadcast %6 : vector<1x128xf32> to vector<2x128xf32>
    %115 = arith.addf %113, %114 : vector<2x128xf32>
    %116 = vector.extract_strided_slice %115 {offsets = [0, 0], sizes = [2, 96], strides = [1, 1]} : vector<2x128xf32> to vector<2x96xf32>
    %117 = arith.negf %116 : vector<2x96xf32>
    %118 = math.exp %117 : vector<2x96xf32>
    %cst_61 = arith.constant 1.000000e+00 : f32
    %119 = vector.broadcast %cst_61 : f32 to vector<2x96xf32>
    %120 = arith.addf %119, %118 : vector<2x96xf32>
    %121 = arith.divf %119, %120 : vector<2x96xf32>
    %122 = vector.extract_strided_slice %115 {offsets = [0, 96], sizes = [2, 32], strides = [1, 1]} : vector<2x128xf32> to vector<2x32xf32>
    %123 = math.tanh %122 : vector<2x32xf32>
    %124 = vector.extract_strided_slice %121 {offsets = [0, 0], sizes = [2, 32], strides = [1, 1]} : vector<2x96xf32> to vector<2x32xf32>
    %125 = vector.extract_strided_slice %121 {offsets = [0, 32], sizes = [2, 32], strides = [1, 1]} : vector<2x96xf32> to vector<2x32xf32>
    %126 = vector.extract_strided_slice %121 {offsets = [0, 64], sizes = [2, 32], strides = [1, 1]} : vector<2x96xf32> to vector<2x32xf32>
    %c0_62 = arith.constant 0 : index
    %c0_63 = arith.constant 0 : index
    %127 = vector.load %arg7[%c0_62, %c0_63] : memref<2x32xf32, #tpu.memory_space<vmem>>, vector<2x32xf32>
    %128 = arith.mulf %125, %127 : vector<2x32xf32>
    %129 = arith.mulf %124, %123 : vector<2x32xf32>
    %130 = arith.addf %128, %129 : vector<2x32xf32>
    %131 = math.tanh %130 : vector<2x32xf32>
    %132 = arith.mulf %126, %131 : vector<2x32xf32>
    %c0_64 = arith.constant 0 : index
    %c0_65 = arith.constant 0 : index
    %133 = vector.load %arg7[%c0_64, %c0_65] : memref<2x32xf32, #tpu.memory_space<vmem>>, vector<2x32xf32>
    tpu.vector_store %arg7[%c0_64, %c0_65], %130 {strides = array<i32>} : memref<2x32xf32, #tpu.memory_space<vmem>>, vector<2x32xf32>,
    %c0_66 = arith.constant 0 : index
    %c0_67 = arith.constant 0 : index
    %134 = vector.load %arg6[%c0_66, %c0_67] : memref<2x32xf32, #tpu.memory_space<vmem>>, vector<2x32xf32>
    tpu.vector_store %arg6[%c0_66, %c0_67], %132 {strides = array<i32>} : memref<2x32xf32, #tpu.memory_space<vmem>>, vector<2x32xf32>,
    %135 = arith.index_cast %c3_i32 : i32 to index
    %c0_68 = arith.constant 0 : index
    %c0_69 = arith.constant 0 : index
    %136 = vector.load %arg5[%135, %c0_68, %c0_69] : memref<8x2x32xf32, #tpu.memory_space<vmem>>, vector<1x2x32xf32>
    %137 = vector.shape_cast %136 : vector<1x2x32xf32> to vector<2x32xf32>
    %138 = vector.shape_cast %132 : vector<2x32xf32> to vector<1x2x32xf32>
    tpu.vector_store %arg5[%135, %c0_68, %c0_69], %138 {strides = array<i32>} : memref<8x2x32xf32, #tpu.memory_space<vmem>>, vector<1x2x32xf32>,
    %c4_i32 = arith.constant 4 : i32
    %139 = arith.index_cast %c4_i32 : i32 to index
    %c0_70 = arith.constant 0 : index
    %c0_71 = arith.constant 0 : index
    %140 = vector.load %arg1[%139, %c0_70, %c0_71] : memref<8x2x64xbf16, #tpu.memory_space<vmem>>, vector<1x2x64xbf16>
    %141 = vector.shape_cast %140 : vector<1x2x64xbf16> to vector<2x64xbf16>
    %cst_72 = arith.constant dense<0.000000e+00> : vector<2x128xf32>
    %142 = tpu.matmul %141, %4, %cst_72 {dimension_numbers = #tpu.dot_dimension_numbers<[1], [0], [0], [1], [0, 0, 1, 1], [], []>} : vector<2x64xbf16>, vector<64x128xbf16>, vector<2x128xf32> -> vector<2x128xf32>
    %c0_73 = arith.constant 0 : index
    %c0_74 = arith.constant 0 : index
    %143 = vector.load %arg6[%c0_73, %c0_74] : memref<2x32xf32, #tpu.memory_space<vmem>>, vector<2x32xf32>
    %144 = arith.truncf %143 : vector<2x32xf32> to vector<2x32xbf16>
    %cst_75 = arith.constant dense<0.000000e+00> : vector<2x128xf32>
    %145 = tpu.matmul %144, %5, %cst_75 {dimension_numbers = #tpu.dot_dimension_numbers<[1], [0], [0], [1], [0, 0, 1, 1], [], []>} : vector<2x32xbf16>, vector<32x128xbf16>, vector<2x128xf32> -> vector<2x128xf32>
    %146 = arith.addf %142, %145 : vector<2x128xf32>
    %147 = vector.broadcast %6 : vector<1x128xf32> to vector<2x128xf32>
    %148 = arith.addf %146, %147 : vector<2x128xf32>
    %149 = vector.extract_strided_slice %148 {offsets = [0, 0], sizes = [2, 96], strides = [1, 1]} : vector<2x128xf32> to vector<2x96xf32>
    %150 = arith.negf %149 : vector<2x96xf32>
    %151 = math.exp %150 : vector<2x96xf32>
    %cst_76 = arith.constant 1.000000e+00 : f32
    %152 = vector.broadcast %cst_76 : f32 to vector<2x96xf32>
    %153 = arith.addf %152, %151 : vector<2x96xf32>
    %154 = arith.divf %152, %153 : vector<2x96xf32>
    %155 = vector.extract_strided_slice %148 {offsets = [0, 96], sizes = [2, 32], strides = [1, 1]} : vector<2x128xf32> to vector<2x32xf32>
    %156 = math.tanh %155 : vector<2x32xf32>
    %157 = vector.extract_strided_slice %154 {offsets = [0, 0], sizes = [2, 32], strides = [1, 1]} : vector<2x96xf32> to vector<2x32xf32>
    %158 = vector.extract_strided_slice %154 {offsets = [0, 32], sizes = [2, 32], strides = [1, 1]} : vector<2x96xf32> to vector<2x32xf32>
    %159 = vector.extract_strided_slice %154 {offsets = [0, 64], sizes = [2, 32], strides = [1, 1]} : vector<2x96xf32> to vector<2x32xf32>
    %c0_77 = arith.constant 0 : index
    %c0_78 = arith.constant 0 : index
    %160 = vector.load %arg7[%c0_77, %c0_78] : memref<2x32xf32, #tpu.memory_space<vmem>>, vector<2x32xf32>
    %161 = arith.mulf %158, %160 : vector<2x32xf32>
    %162 = arith.mulf %157, %156 : vector<2x32xf32>
    %163 = arith.addf %161, %162 : vector<2x32xf32>
    %164 = math.tanh %163 : vector<2x32xf32>
    %165 = arith.mulf %159, %164 : vector<2x32xf32>
    %c0_79 = arith.constant 0 : index
    %c0_80 = arith.constant 0 : index
    %166 = vector.load %arg7[%c0_79, %c0_80] : memref<2x32xf32, #tpu.memory_space<vmem>>, vector<2x32xf32>
    tpu.vector_store %arg7[%c0_79, %c0_80], %163 {strides = array<i32>} : memref<2x32xf32, #tpu.memory_space<vmem>>, vector<2x32xf32>,
    %c0_81 = arith.constant 0 : index
    %c0_82 = arith.constant 0 : index
    %167 = vector.load %arg6[%c0_81, %c0_82] : memref<2x32xf32, #tpu.memory_space<vmem>>, vector<2x32xf32>
    tpu.vector_store %arg6[%c0_81, %c0_82], %165 {strides = array<i32>} : memref<2x32xf32, #tpu.memory_space<vmem>>, vector<2x32xf32>,
    %168 = arith.index_cast %c4_i32 : i32 to index
    %c0_83 = arith.constant 0 : index
    %c0_84 = arith.constant 0 : index
    %169 = vector.load %arg5[%168, %c0_83, %c0_84] : memref<8x2x32xf32, #tpu.memory_space<vmem>>, vector<1x2x32xf32>
    %170 = vector.shape_cast %169 : vector<1x2x32xf32> to vector<2x32xf32>
    %171 = vector.shape_cast %165 : vector<2x32xf32> to vector<1x2x32xf32>
    tpu.vector_store %arg5[%168, %c0_83, %c0_84], %171 {strides = array<i32>} : memref<8x2x32xf32, #tpu.memory_space<vmem>>, vector<1x2x32xf32>,
    %c5_i32 = arith.constant 5 : i32
    %172 = arith.index_cast %c5_i32 : i32 to index
    %c0_85 = arith.constant 0 : index
    %c0_86 = arith.constant 0 : index
    %173 = vector.load %arg1[%172, %c0_85, %c0_86] : memref<8x2x64xbf16, #tpu.memory_space<vmem>>, vector<1x2x64xbf16>
    %174 = vector.shape_cast %173 : vector<1x2x64xbf16> to vector<2x64xbf16>
    %cst_87 = arith.constant dense<0.000000e+00> : vector<2x128xf32>
    %175 = tpu.matmul %174, %4, %cst_87 {dimension_numbers = #tpu.dot_dimension_numbers<[1], [0], [0], [1], [0, 0, 1, 1], [], []>} : vector<2x64xbf16>, vector<64x128xbf16>, vector<2x128xf32> -> vector<2x128xf32>
    %c0_88 = arith.constant 0 : index
    %c0_89 = arith.constant 0 : index
    %176 = vector.load %arg6[%c0_88, %c0_89] : memref<2x32xf32, #tpu.memory_space<vmem>>, vector<2x32xf32>
    %177 = arith.truncf %176 : vector<2x32xf32> to vector<2x32xbf16>
    %cst_90 = arith.constant dense<0.000000e+00> : vector<2x128xf32>
    %178 = tpu.matmul %177, %5, %cst_90 {dimension_numbers = #tpu.dot_dimension_numbers<[1], [0], [0], [1], [0, 0, 1, 1], [], []>} : vector<2x32xbf16>, vector<32x128xbf16>, vector<2x128xf32> -> vector<2x128xf32>
    %179 = arith.addf %175, %178 : vector<2x128xf32>
    %180 = vector.broadcast %6 : vector<1x128xf32> to vector<2x128xf32>
    %181 = arith.addf %179, %180 : vector<2x128xf32>
    %182 = vector.extract_strided_slice %181 {offsets = [0, 0], sizes = [2, 96], strides = [1, 1]} : vector<2x128xf32> to vector<2x96xf32>
    %183 = arith.negf %182 : vector<2x96xf32>
    %184 = math.exp %183 : vector<2x96xf32>
    %cst_91 = arith.constant 1.000000e+00 : f32
    %185 = vector.broadcast %cst_91 : f32 to vector<2x96xf32>
    %186 = arith.addf %185, %184 : vector<2x96xf32>
    %187 = arith.divf %185, %186 : vector<2x96xf32>
    %188 = vector.extract_strided_slice %181 {offsets = [0, 96], sizes = [2, 32], strides = [1, 1]} : vector<2x128xf32> to vector<2x32xf32>
    %189 = math.tanh %188 : vector<2x32xf32>
    %190 = vector.extract_strided_slice %187 {offsets = [0, 0], sizes = [2, 32], strides = [1, 1]} : vector<2x96xf32> to vector<2x32xf32>
    %191 = vector.extract_strided_slice %187 {offsets = [0, 32], sizes = [2, 32], strides = [1, 1]} : vector<2x96xf32> to vector<2x32xf32>
    %192 = vector.extract_strided_slice %187 {offsets = [0, 64], sizes = [2, 32], strides = [1, 1]} : vector<2x96xf32> to vector<2x32xf32>
    %c0_92 = arith.constant 0 : index
    %c0_93 = arith.constant 0 : index
    %193 = vector.load %arg7[%c0_92, %c0_93] : memref<2x32xf32, #tpu.memory_space<vmem>>, vector<2x32xf32>
    %194 = arith.mulf %191, %193 : vector<2x32xf32>
    %195 = arith.mulf %190, %189 : vector<2x32xf32>
    %196 = arith.addf %194, %195 : vector<2x32xf32>
    %197 = math.tanh %196 : vector<2x32xf32>
    %198 = arith.mulf %192, %197 : vector<2x32xf32>
    %c0_94 = arith.constant 0 : index
    %c0_95 = arith.constant 0 : index
    %199 = vector.load %arg7[%c0_94, %c0_95] : memref<2x32xf32, #tpu.memory_space<vmem>>, vector<2x32xf32>
    tpu.vector_store %arg7[%c0_94, %c0_95], %196 {strides = array<i32>} : memref<2x32xf32, #tpu.memory_space<vmem>>, vector<2x32xf32>,
    %c0_96 = arith.constant 0 : index
    %c0_97 = arith.constant 0 : index
    %200 = vector.load %arg6[%c0_96, %c0_97] : memref<2x32xf32, #tpu.memory_space<vmem>>, vector<2x32xf32>
    tpu.vector_store %arg6[%c0_96, %c0_97], %198 {strides = array<i32>} : memref<2x32xf32, #tpu.memory_space<vmem>>, vector<2x32xf32>,
    %201 = arith.index_cast %c5_i32 : i32 to index
    %c0_98 = arith.constant 0 : index
    %c0_99 = arith.constant 0 : index
    %202 = vector.load %arg5[%201, %c0_98, %c0_99] : memref<8x2x32xf32, #tpu.memory_space<vmem>>, vector<1x2x32xf32>
    %203 = vector.shape_cast %202 : vector<1x2x32xf32> to vector<2x32xf32>
    %204 = vector.shape_cast %198 : vector<2x32xf32> to vector<1x2x32xf32>
    tpu.vector_store %arg5[%201, %c0_98, %c0_99], %204 {strides = array<i32>} : memref<8x2x32xf32, #tpu.memory_space<vmem>>, vector<1x2x32xf32>,
    %c6_i32 = arith.constant 6 : i32
    %205 = arith.index_cast %c6_i32 : i32 to index
    %c0_100 = arith.constant 0 : index
    %c0_101 = arith.constant 0 : index
    %206 = vector.load %arg1[%205, %c0_100, %c0_101] : memref<8x2x64xbf16, #tpu.memory_space<vmem>>, vector<1x2x64xbf16>
    %207 = vector.shape_cast %206 : vector<1x2x64xbf16> to vector<2x64xbf16>
    %cst_102 = arith.constant dense<0.000000e+00> : vector<2x128xf32>
    %208 = tpu.matmul %207, %4, %cst_102 {dimension_numbers = #tpu.dot_dimension_numbers<[1], [0], [0], [1], [0, 0, 1, 1], [], []>} : vector<2x64xbf16>, vector<64x128xbf16>, vector<2x128xf32> -> vector<2x128xf32>
    %c0_103 = arith.constant 0 : index
    %c0_104 = arith.constant 0 : index
    %209 = vector.load %arg6[%c0_103, %c0_104] : memref<2x32xf32, #tpu.memory_space<vmem>>, vector<2x32xf32>
    %210 = arith.truncf %209 : vector<2x32xf32> to vector<2x32xbf16>
    %cst_105 = arith.constant dense<0.000000e+00> : vector<2x128xf32>
    %211 = tpu.matmul %210, %5, %cst_105 {dimension_numbers = #tpu.dot_dimension_numbers<[1], [0], [0], [1], [0, 0, 1, 1], [], []>} : vector<2x32xbf16>, vector<32x128xbf16>, vector<2x128xf32> -> vector<2x128xf32>
    %212 = arith.addf %208, %211 : vector<2x128xf32>
    %213 = vector.broadcast %6 : vector<1x128xf32> to vector<2x128xf32>
    %214 = arith.addf %212, %213 : vector<2x128xf32>
    %215 = vector.extract_strided_slice %214 {offsets = [0, 0], sizes = [2, 96], strides = [1, 1]} : vector<2x128xf32> to vector<2x96xf32>
    %216 = arith.negf %215 : vector<2x96xf32>
    %217 = math.exp %216 : vector<2x96xf32>
    %cst_106 = arith.constant 1.000000e+00 : f32
    %218 = vector.broadcast %cst_106 : f32 to vector<2x96xf32>
    %219 = arith.addf %218, %217 : vector<2x96xf32>
    %220 = arith.divf %218, %219 : vector<2x96xf32>
    %221 = vector.extract_strided_slice %214 {offsets = [0, 96], sizes = [2, 32], strides = [1, 1]} : vector<2x128xf32> to vector<2x32xf32>
    %222 = math.tanh %221 : vector<2x32xf32>
    %223 = vector.extract_strided_slice %220 {offsets = [0, 0], sizes = [2, 32], strides = [1, 1]} : vector<2x96xf32> to vector<2x32xf32>
    %224 = vector.extract_strided_slice %220 {offsets = [0, 32], sizes = [2, 32], strides = [1, 1]} : vector<2x96xf32> to vector<2x32xf32>
    %225 = vector.extract_strided_slice %220 {offsets = [0, 64], sizes = [2, 32], strides = [1, 1]} : vector<2x96xf32> to vector<2x32xf32>
    %c0_107 = arith.constant 0 : index
    %c0_108 = arith.constant 0 : index
    %226 = vector.load %arg7[%c0_107, %c0_108] : memref<2x32xf32, #tpu.memory_space<vmem>>, vector<2x32xf32>
    %227 = arith.mulf %224, %226 : vector<2x32xf32>
    %228 = arith.mulf %223, %222 : vector<2x32xf32>
    %229 = arith.addf %227, %228 : vector<2x32xf32>
    %230 = math.tanh %229 : vector<2x32xf32>
    %231 = arith.mulf %225, %230 : vector<2x32xf32>
    %c0_109 = arith.constant 0 : index
    %c0_110 = arith.constant 0 : index
    %232 = vector.load %arg7[%c0_109, %c0_110] : memref<2x32xf32, #tpu.memory_space<vmem>>, vector<2x32xf32>
    tpu.vector_store %arg7[%c0_109, %c0_110], %229 {strides = array<i32>} : memref<2x32xf32, #tpu.memory_space<vmem>>, vector<2x32xf32>,
    %c0_111 = arith.constant 0 : index
    %c0_112 = arith.constant 0 : index
    %233 = vector.load %arg6[%c0_111, %c0_112] : memref<2x32xf32, #tpu.memory_space<vmem>>, vector<2x32xf32>
    tpu.vector_store %arg6[%c0_111, %c0_112], %231 {strides = array<i32>} : memref<2x32xf32, #tpu.memory_space<vmem>>, vector<2x32xf32>,
    %234 = arith.index_cast %c6_i32 : i32 to index
    %c0_113 = arith.constant 0 : index
    %c0_114 = arith.constant 0 : index
    %235 = vector.load %arg5[%234, %c0_113, %c0_114] : memref<8x2x32xf32, #tpu.memory_space<vmem>>, vector<1x2x32xf32>
    %236 = vector.shape_cast %235 : vector<1x2x32xf32> to vector<2x32xf32>
    %237 = vector.shape_cast %231 : vector<2x32xf32> to vector<1x2x32xf32>
    tpu.vector_store %arg5[%234, %c0_113, %c0_114], %237 {strides = array<i32>} : memref<8x2x32xf32, #tpu.memory_space<vmem>>, vector<1x2x32xf32>,
    %c7_i32 = arith.constant 7 : i32
    %238 = arith.index_cast %c7_i32 : i32 to index
    %c0_115 = arith.constant 0 : index
    %c0_116 = arith.constant 0 : index
    %239 = vector.load %arg1[%238, %c0_115, %c0_116] : memref<8x2x64xbf16, #tpu.memory_space<vmem>>, vector<1x2x64xbf16>
    %240 = vector.shape_cast %239 : vector<1x2x64xbf16> to vector<2x64xbf16>
    %cst_117 = arith.constant dense<0.000000e+00> : vector<2x128xf32>
    %241 = tpu.matmul %240, %4, %cst_117 {dimension_numbers = #tpu.dot_dimension_numbers<[1], [0], [0], [1], [0, 0, 1, 1], [], []>} : vector<2x64xbf16>, vector<64x128xbf16>, vector<2x128xf32> -> vector<2x128xf32>
    %c0_118 = arith.constant 0 : index
    %c0_119 = arith.constant 0 : index
    %242 = vector.load %arg6[%c0_118, %c0_119] : memref<2x32xf32, #tpu.memory_space<vmem>>, vector<2x32xf32>
    %243 = arith.truncf %242 : vector<2x32xf32> to vector<2x32xbf16>
    %cst_120 = arith.constant dense<0.000000e+00> : vector<2x128xf32>
    %244 = tpu.matmul %243, %5, %cst_120 {dimension_numbers = #tpu.dot_dimension_numbers<[1], [0], [0], [1], [0, 0, 1, 1], [], []>} : vector<2x32xbf16>, vector<32x128xbf16>, vector<2x128xf32> -> vector<2x128xf32>
    %245 = arith.addf %241, %244 : vector<2x128xf32>
    %246 = vector.broadcast %6 : vector<1x128xf32> to vector<2x128xf32>
    %247 = arith.addf %245, %246 : vector<2x128xf32>
    %248 = vector.extract_strided_slice %247 {offsets = [0, 0], sizes = [2, 96], strides = [1, 1]} : vector<2x128xf32> to vector<2x96xf32>
    %249 = arith.negf %248 : vector<2x96xf32>
    %250 = math.exp %249 : vector<2x96xf32>
    %cst_121 = arith.constant 1.000000e+00 : f32
    %251 = vector.broadcast %cst_121 : f32 to vector<2x96xf32>
    %252 = arith.addf %251, %250 : vector<2x96xf32>
    %253 = arith.divf %251, %252 : vector<2x96xf32>
    %254 = vector.extract_strided_slice %247 {offsets = [0, 96], sizes = [2, 32], strides = [1, 1]} : vector<2x128xf32> to vector<2x32xf32>
    %255 = math.tanh %254 : vector<2x32xf32>
    %256 = vector.extract_strided_slice %253 {offsets = [0, 0], sizes = [2, 32], strides = [1, 1]} : vector<2x96xf32> to vector<2x32xf32>
    %257 = vector.extract_strided_slice %253 {offsets = [0, 32], sizes = [2, 32], strides = [1, 1]} : vector<2x96xf32> to vector<2x32xf32>
    %258 = vector.extract_strided_slice %253 {offsets = [0, 64], sizes = [2, 32], strides = [1, 1]} : vector<2x96xf32> to vector<2x32xf32>
    %c0_122 = arith.constant 0 : index
    %c0_123 = arith.constant 0 : index
    %259 = vector.load %arg7[%c0_122, %c0_123] : memref<2x32xf32, #tpu.memory_space<vmem>>, vector<2x32xf32>
    %260 = arith.mulf %257, %259 : vector<2x32xf32>
    %261 = arith.mulf %256, %255 : vector<2x32xf32>
    %262 = arith.addf %260, %261 : vector<2x32xf32>
    %263 = math.tanh %262 : vector<2x32xf32>
    %264 = arith.mulf %258, %263 : vector<2x32xf32>
    %c0_124 = arith.constant 0 : index
    %c0_125 = arith.constant 0 : index
    %265 = vector.load %arg7[%c0_124, %c0_125] : memref<2x32xf32, #tpu.memory_space<vmem>>, vector<2x32xf32>
    tpu.vector_store %arg7[%c0_124, %c0_125], %262 {strides = array<i32>} : memref<2x32xf32, #tpu.memory_space<vmem>>, vector<2x32xf32>,
    %c0_126 = arith.constant 0 : index
    %c0_127 = arith.constant 0 : index
    %266 = vector.load %arg6[%c0_126, %c0_127] : memref<2x32xf32, #tpu.memory_space<vmem>>, vector<2x32xf32>
    tpu.vector_store %arg6[%c0_126, %c0_127], %264 {strides = array<i32>} : memref<2x32xf32, #tpu.memory_space<vmem>>, vector<2x32xf32>,
    %267 = arith.index_cast %c7_i32 : i32 to index
    %c0_128 = arith.constant 0 : index
    %c0_129 = arith.constant 0 : index
    %268 = vector.load %arg5[%267, %c0_128, %c0_129] : memref<8x2x32xf32, #tpu.memory_space<vmem>>, vector<1x2x32xf32>
    %269 = vector.shape_cast %268 : vector<1x2x32xf32> to vector<2x32xf32>
    %270 = vector.shape_cast %264 : vector<2x32xf32> to vector<1x2x32xf32>
    tpu.vector_store %arg5[%267, %c0_128, %c0_129], %270 {strides = array<i32>} : memref<8x2x32xf32, #tpu.memory_space<vmem>>, vector<1x2x32xf32>,
    %c8_i32 = arith.constant 8 : i32
    return
  }
  func.func @transform_0(%arg0: i32) -> (i32, i32, i32) {
    %c0_i32 = arith.constant 0 : i32
    %c0_i32_0 = arith.constant 0 : i32
    %c0_i32_1 = arith.constant 0 : i32
    return %c0_i32, %arg0, %c0_i32_0 : i32, i32, i32
  }
  func.func @transform_1(%arg0: i32) -> (i32, i32) {
    %c0_i32 = arith.constant 0 : i32
    %c0_i32_0 = arith.constant 0 : i32
    %c0_i32_1 = arith.constant 0 : i32
    return %c0_i32, %c0_i32_0 : i32, i32
  }
  func.func @transform_2(%arg0: i32) -> (i32, i32) {
    %c0_i32 = arith.constant 0 : i32
    %c0_i32_0 = arith.constant 0 : i32
    %c0_i32_1 = arith.constant 0 : i32
    return %c0_i32, %c0_i32_0 : i32, i32
  }
  func.func @transform_3(%arg0: i32) -> (i32, i32) {
    %c0_i32 = arith.constant 0 : i32
    %c0_i32_0 = arith.constant 0 : i32
    %c0_i32_1 = arith.constant 0 : i32
    return %c0_i32, %c0_i32_0 : i32, i32
  }
  func.func @transform_4(%arg0: i32) -> (i32, i32, i32) {
    %c0_i32 = arith.constant 0 : i32
    %c0_i32_0 = arith.constant 0 : i32
    %c0_i32_1 = arith.constant 0 : i32
    return %c0_i32, %arg0, %c0_i32_0 : i32, i32, i32
  }
}

</mosaic_0001>

<bundles_post_ra>
// kernel: tpu_custom_call.1
= control target key start
LH: loop header
LB: loop body
LE: loop exit
PB: predicated region body
PF: predicated region fallthrough
CT: control target
= control target key end

     0   :  { %9 = vsyncpa [#allocation5], 0  ;;  %s1963_s0 = inlined_call_operand.hbm [shape: bf16[8,2,64], index: 0, kind: input, shape index: {}]   ;;  %s1964_s1 = inlined_call_operand.hbm [shape: bf16[64,128], index: 1, kind: input, shape index: {}]   ;;  %s1965_s2 = inlined_call_operand.vmem [shape: f32[1,128], index: 2, kind: input, shape index: {}]   ;;  %s1966_s3 = inlined_call_operand.hbm [shape: bf16[32,128], index: 3, kind: input, shape index: {}]   ;;  %s1967_s4 = inlined_call_operand.hbm [shape: f32[8,2,32], index: 4, kind: output, shape index: {}]  }
   0x1   :  { %10 = vsyncpa [#allocation8], 0 }
   0x2   :  { %11 = vsyncpa [#allocation6], 0  ;;  %s1624_s15 = smov [#allocation7]   ;;  %s1530_s19 = scalar_lea.hbm %s1964_s1, 512 }
   0x3   :  { %s29_s16 = sshll.u32 %s1624_s15, 4  ;;  %p1531_p0 = scmp.ne.s32.totalorder %s1964_s1, %s1530_s19  ;;  %s30_s16 = int_to_ptr.vmem [resolvable:$true] %s29_s16 }
   0x4   :  { %p1534_p1 = scmp.lt.u32.totalorder %s1530_s19, %s1964_s1 }
   0x6   :  { %p1536_p2 = pnand %p1534_p1, %p1531_p0 }
   0x8   :  { %1539 = shalt.err (!%p1536_p2)
}
   0x9   :  { %s1540_s24 = scalar_lea.vmem %s30_s16, 512  ;;  %p1545_p4 = scmp.lt.s32.totalorder %s30_s16, %s30_s16 }
   0xa   :  { %p1541_p3 = scmp.ne.s32.totalorder %s30_s16, %s1540_s24  ;;  %p1546_p5 = scmp.lt.s32.totalorder %s1540_s24, %s1540_s24 }
   0xc   :  { %p1547_p6 = por %p1546_p5, %p1545_p4 }
   0xe   :  { %p1548_p7 = pnand %p1547_p6, %p1541_p3 }
  0x10   :  { %1551 = shalt.err (!%p1548_p7)
}
  0x11   :  { %s1625_s25 = smov 64   ;;  %s1626_s26 = smov 4  }
  0x12   :  { %35 = dma.hbm_to_vmem [thread:$0]  %s1964_s1, 512, %s30_s16, [#allocation8], %s1625_s25, %s1625_s25, %s1626_s26  }
  0x13   :  { %s1627_s29 = smov [#allocation4]   ;;  %s1552_s7 = scalar_lea.hbm %s1963_s0, 128 }
  0x14   :  { %s17_s30 = sshll.u32 %s1627_s29, 4  ;;  %p1553_p8 = scmp.ne.s32.totalorder %s1963_s0, %s1552_s7  ;;  %s18_s30 = int_to_ptr.vmem [resolvable:$true] %s17_s30 }
  0x15   :  { %p1556_p9 = scmp.lt.u32.totalorder %s1552_s7, %s1963_s0 }
  0x17   :  { %p1558_p10 = pnand %p1556_p9, %p1553_p8 }
  0x19   :  { %1561 = shalt.err (!%p1558_p10)
}
  0x1a   :  { %s1562_s12 = scalar_lea.vmem %s18_s30, 128  ;;  %p1567_p12 = scmp.lt.s32.totalorder %s18_s30, %s18_s30 }
  0x1b   :  { %p1563_p11 = scmp.ne.s32.totalorder %s18_s30, %s1562_s12  ;;  %p1568_p13 = scmp.lt.s32.totalorder %s1562_s12, %s1562_s12 }
  0x1d   :  { %p1569_p0 = por %p1568_p13, %p1567_p12 }
  0x1f   :  { %p1570_p1 = pnand %p1569_p0, %p1563_p11 }
  0x21   :  { %1573 = shalt.err (!%p1570_p1)
}
  0x22   :  { %s1628_s1 = smov 16   ;;  %s1629_s13 = smov 1  }
  0x23   :  { %23 = dma.hbm_to_vmem [thread:$0]  %s1963_s0, 128, %s18_s30, [#allocation5], %s1628_s1, %s1628_s1, %s1629_s13  }
  0x24   :  { %s1630_s16 = smov [#allocation9]   ;;  %s1574_s20 = scalar_lea.hbm %s1966_s3, 256 }
  0x25   :  { %s43_s17 = sshll.u32 %s1630_s16, 4  ;;  %p1575_p2 = scmp.ne.s32.totalorder %s1966_s3, %s1574_s20  ;;  %s44_s17 = int_to_ptr.vmem [resolvable:$true] %s43_s17 }
  0x26   :  { %p1578_p3 = scmp.lt.u32.totalorder %s1574_s20, %s1966_s3 }
  0x28   :  { %p1580_p4 = pnand %p1578_p3, %p1575_p2 }
  0x2a   :  { %1583 = shalt.err (!%p1580_p4)
}
  0x2b   :  { %s1584_s27 = scalar_lea.vmem %s44_s17, 256  ;;  %p1589_p6 = scmp.lt.s32.totalorder %s44_s17, %s44_s17 }
  0x2c   :  { %p1585_p5 = scmp.ne.s32.totalorder %s44_s17, %s1584_s27  ;;  %p1590_p7 = scmp.lt.s32.totalorder %s1584_s27, %s1584_s27 }
  0x2e   :  { %p1591_p8 = por %p1590_p7, %p1589_p6 }
  0x30   :  { %p1592_p9 = pnand %p1591_p8, %p1585_p5 }
  0x32   :  { %1595 = shalt.err (!%p1592_p9)
}
  0x33   :  { %49 = dma.hbm_to_vmem [thread:$0]  %s1966_s3, 256, %s44_s17, [#allocation8], %s1625_s25, %s1625_s25, %s1626_s26  }
  0x34   :  { %1618 = dma.done.wait [#allocation5], 128  }
  0x35   :  { %1619 = vsyncadd [#allocation5], 4294967168 }
  0x36   :  { %1620 = dma.done.wait [#allocation8], 768  }
  0x37   :  { %1621 = vsyncadd [#allocation8], 4294966528  ;;  %vm60_vm0 = vcmask 254976   ;;  %v1631_v0 = vmov 0.0   ;;  %vm1632_vm1 = vmmov 0   ;;  %v1714_v1 = vld [vmem:[#allocation9] sm:$0xff]  }
  0x38   :  { %1287 = vmatprep.subr.bf16.mxu1 %v1631_v0  ;;  %1291 = vmatprep.mubr.msk.bf16.mxu1 %vm1632_vm1, %v1631_v0  ;;  %61 = vst.msk [vmem:[#allocation2] sm:$0x3] %vm60_vm0, %v1631_v0  ;;  %62 = vst.msk [vmem:[#allocation3] sm:$0x3] %vm60_vm0, %v1631_v0  ;;  %v1716_v2 = vld [vmem:[#allocation9 + $0x8] sm:$0xff]   ;;  %vm91_vm2 = vcmask 261120  }
  0x39   :  { %1307 = vmatprep.subr.bf16.mxu0 %v1631_v0  ;;  %1311 = vmatprep.mubr.msk.bf16.mxu0 %vm1632_vm1, %v1631_v0  ;;  %v1723_v5 = vld [vmem:[#allocation7] sm:$0xff]   ;;  %v1730_v6 = vld [vmem:[#allocation7 + $0x8] sm:$0xff]   ;;  %v1736_v7 = vld [vmem:[#allocation7 + $0x10] sm:$0xff]   ;;  %vm159_vm3 = vcmask 523264   ;;  %s1633_s29 = smov 32   ;;  %s1635_s30 = smov [#allocation10]  }
  0x3a   :  { %1288 = vmatpush3.bf16.msra.mxu1 %v1714_v1  ;;  %1308 = vmatpush3.bf16.msra.mxu0 %v1714_v1  ;;  %v1740_v8 = vld [vmem:[#allocation7 + $0x18] sm:$0xff]   ;;  %v1755_v14 = vld [vmem:[%s1965_s2] ss:$0 sm:$0xff]  ;;  %s1634_s2 = smov 96   ;;  %s1179_s5 = sshll.u32 %s1635_s30, 4  ;;  %s1180_s5 = int_to_ptr.vmem [resolvable:$true] %s1179_s5 }
  0x3b   :  { %1289 = vmatprep.subr.bf16.mxu1 %v1631_v0  ;;  %1309 = vmatprep.subr.bf16.mxu0 %v1631_v0  ;;  %v76_v9 = vld [vmem:[#allocation4] sm:$0x1]  ;;  %v251_v41 = vld [vmem:[#allocation4 + $0x1] sm:$0x1]  ;;  %s1596_s6 = scalar_lea.vmem %s1180_s5, 256  ;;  %p1601_p11 = scmp.lt.s32.totalorder %s1180_s5, %s1180_s5 }
  0x3c   :  { %p1597_p10 = scmp.ne.s32.totalorder %s1180_s5, %s1596_s6  ;;  %p1602_p12 = scmp.lt.s32.totalorder %s1596_s6, %s1596_s6 }
  0x3e   :  { %1290 = vmatpush3.bf16.msra.mxu1 %v1716_v2  ;;  %1310 = vmatpush3.bf16.msra.mxu0 %v1716_v2  ;;  %p1603_p13 = por %p1602_p12, %p1601_p11 }
  0x3f   :  { %v77_v3 = vld [vmem:[#allocation2] sm:$0x3]  ;;  %1295 = vmatprep.subr.bf16.mxu1 %v1631_v0  ;;  %1315 = vmatprep.subr.bf16.mxu0 %v1631_v0  ;;  %v217_v22 = vld [vmem:[#allocation3] sm:$0x3] }
  0x40   :  { %v78_v4 = vpack.c.bf16 %v77_v3, %v77_v3  ;;  %p1604_p0 = pnand %p1603_p13, %p1597_p10 }
  0x42   :  { %1292 = vmatmul.mubr.msk.bf16.vlgmr.msra.gmra.mrb[0].mxu1 %vm91_vm2, %v78_v4 }
  0x43   :  { %1296 = vmatpush3.bf16.msra.mxu1 %v1723_v5  ;;  %1303 = vmatprep.mubr.msk.bf16.mxu1 %vm1632_vm1, %v1631_v0 }
  0x44   :  { %1297 = vmatprep.subr.bf16.mxu1 %v1631_v0 }
  0x47   :  { %1298 = vmatpush3.bf16.msra.mxu1 %v1730_v6 }
  0x48   :  { %1299 = vmatprep.subr.bf16.mxu1 %v1631_v0 }
  0x4b   :  { %1300 = vmatpush3.bf16.msra.mxu1 %v1736_v7 }
  0x4c   :  { %1301 = vmatprep.subr.bf16.mxu1 %v1631_v0 }
  0x4f   :  { %1302 = vmatpush3.bf16.msra.mxu1 %v1740_v8 }
  0x50   :  { %1327 = vmatprep.subr.bf16.mxu1 %v1631_v0 }
  0x52   :  { %1304 = vmatmul.mubr.msk.bf16.vlgmr.msra.gmra.mrb[4].mxu1 %vm159_vm3, %v76_v9 }
  0x53   :  { %1328 = vmatpush3.bf16.msra.mxu1 %v1714_v1  ;;  %1331 = vmatprep.mubr.msk.bf16.mxu1 %vm1632_vm1, %v1631_v0 }
  0x54   :  { %1329 = vmatprep.subr.bf16.mxu1 %v1631_v0 }
  0x57   :  { %1330 = vmatpush3.bf16.msra.mxu1 %v1716_v2 }
  0x58   :  { %1335 = vmatprep.subr.bf16.mxu1 %v1631_v0 }
 0x115   :  { %v129_v10 = vpop.f32.mrb[0].mxu1 }
 0x116   :  { %v1293_v11 = vpop.f32.mrb[1].mxu1 }
 0x117   :  { %v132_v12 = vpop.f32.mrb[2].mxu1 }
 0x118   :  { %v1294_v13 = vpop.f32.mrb[3].mxu1 }
 0x125   :  { %v197_v15 = vpop.f32.mrb[4].mxu1 }
 0x126   :  { %v198_v16 = vadd.f32 %v197_v15, %v129_v10  ;;  %v1305_v17 = vpop.f32.mrb[5].mxu1  ;;  %v383_v15 = vld [vmem:[#allocation4 + $0x2] sm:$0x1] }
 0x127   :  { %v200_v18 = vpop.f32.mrb[6].mxu1 }
 0x128   :  { %v209_v19 = vadd.f32 %v1755_v14, %v198_v16  ;;  %v1306_v20 = vpop.f32.mrb[7].mxu1 }
 0x12a   :  { %1466 = vtanh.f32 %v209_v19  ;;  %v1201_v23 = vmul.f32 -1.442695, %v209_v19 }
 0x12c   :  { %1468 = vpow2.f32 %v1201_v23 }
 0x134   :  { %v1467_v21 = vpop.eup %1466 }
 0x135   :  { %224 = vrot.lane.b32.xlu0 %v1467_v21, %s1633_s29 }
 0x136   :  { %v1469_v24 = vpop.eup %1468 }
 0x137   :  { %v213_v25 = vadd.f32 1.0, %v1469_v24 }
 0x139   :  { %219 = vrot.lane.b32.xlu0 %v217_v22, %s1633_s29  ;;  %1470 = vrcp.f32 %v213_v25 }
 0x143   :  { %v1471_v26 = vpop.eup %1470 }
 0x1a7   :  { %v225_v27 = vpop.permute.xlu0 %224 }
 0x1a8   :  { %v227_v28 = vmul.f32 %v1471_v26, %v225_v27 }
 0x1aa   :  { %229 = vrot.lane.b32.xlu1 %v227_v28, %s1633_s29 }
 0x1ab   :  { %v220_v29 = vpop.permute.xlu0 %219 }
 0x1ac   :  { %v222_v30 = vmul.f32 %v1471_v26, %v220_v29 }
 0x21c   :  { %v230_v31 = vpop.permute.xlu1 %229 }
 0x21d   :  { %v232_v32 = vadd.f32 %v230_v31, %v222_v30 }
 0x21f   :  { %1472 = vtanh.f32 %v232_v32 }
 0x229   :  { %v1473_v33 = vpop.eup %1472 }
 0x22a   :  { %235 = vrot.lane.b32.xlu1 %v1473_v33, %s1633_s29 }
 0x22e   :  { %240 = vrot.lane.b32.xlu1 %v232_v32, %s1634_s2 }
 0x29c   :  { %v236_v34 = vpop.permute.xlu1 %235 }
 0x29d   :  { %v238_v35 = vmul.f32 %v1471_v26, %v236_v34 }
 0x29f   :  { %245 = vrot.lane.b32.xlu0 %v238_v35, %s1625_s25 }
 0x2a0   :  { %v241_v36 = vpop.permute.xlu1 %240 }
 0x2a1   :  { %243 = vst.msk [vmem:[#allocation3] sm:$0x3] %vm60_vm0, %v241_v36 }
 0x2a8   :  { %v348_v37 = vld [vmem:[#allocation3] sm:$0x3] }
 0x2a9   :  { %350 = vrot.lane.b32.xlu1 %v348_v37, %s1633_s29 }
 0x311   :  { %v246_v38 = vpop.permute.xlu0 %245 }
 0x312   :  { %248 = vst.msk [vmem:[#allocation2] sm:$0x3] %vm60_vm0, %v246_v38  ;;  %249 = vst.msk [vmem:[#allocation10] sm:$0x3] %vm60_vm0, %v246_v38 }
 0x319   :  { %v252_v39 = vld [vmem:[#allocation2] sm:$0x3] }
 0x31a   :  { %v253_v40 = vpack.c.bf16 %v252_v39, %v252_v39 }
 0x31b   :  { %v351_v59 = vpop.permute.xlu1 %350 }
 0x31c   :  { %1312 = vmatmul.mubr.msk.bf16.vlgmr.msra.gmra.mrb[0].mxu0 %vm91_vm2, %v253_v40 }
 0x31d   :  { %1316 = vmatpush3.bf16.msra.mxu0 %v1723_v5  ;;  %1323 = vmatprep.mubr.msk.bf16.mxu0 %vm1632_vm1, %v1631_v0 }
 0x31e   :  { %1317 = vmatprep.subr.bf16.mxu0 %v1631_v0 }
 0x321   :  { %1318 = vmatpush3.bf16.msra.mxu0 %v1730_v6 }
 0x322   :  { %1319 = vmatprep.subr.bf16.mxu0 %v1631_v0 }
 0x325   :  { %1320 = vmatpush3.bf16.msra.mxu0 %v1736_v7 }
 0x326   :  { %1321 = vmatprep.subr.bf16.mxu0 %v1631_v0 }
 0x329   :  { %1322 = vmatpush3.bf16.msra.mxu0 %v1740_v8 }
 0x32a   :  { %1347 = vmatprep.subr.bf16.mxu0 %v1631_v0 }
 0x32c   :  { %1324 = vmatmul.mubr.msk.bf16.vlgmr.msra.gmra.mrb[4].mxu0 %vm159_vm3, %v251_v41 }
 0x32d   :  { %1348 = vmatpush3.bf16.msra.mxu0 %v1714_v1  ;;  %1351 = vmatprep.mubr.msk.bf16.mxu0 %vm1632_vm1, %v1631_v0 }
 0x32e   :  { %1349 = vmatprep.subr.bf16.mxu0 %v1631_v0 }
 0x331   :  { %1350 = vmatpush3.bf16.msra.mxu0 %v1716_v2 }
 0x332   :  { %1355 = vmatprep.subr.bf16.mxu0 %v1631_v0 }
 0x3ef   :  { %v291_v42 = vpop.f32.mrb[0].mxu0 }
 0x3f0   :  { %v1313_v43 = vpop.f32.mrb[1].mxu0 }
 0x3f1   :  { %v294_v44 = vpop.f32.mrb[2].mxu0 }
 0x3f2   :  { %v1314_v45 = vpop.f32.mrb[3].mxu0 }
 0x3f3   :  { %v515_v45 = vld [vmem:[#allocation4 + $0x3] sm:$0x1] }
 0x3ff   :  { %v334_v46 = vpop.f32.mrb[4].mxu0 }
 0x400   :  { %v335_v47 = vadd.f32 %v334_v46, %v291_v42  ;;  %v1325_v48 = vpop.f32.mrb[5].mxu0 }
 0x401   :  { %v337_v49 = vpop.f32.mrb[6].mxu0 }
 0x402   :  { %v340_v50 = vadd.f32 %v1755_v14, %v335_v47  ;;  %v1326_v51 = vpop.f32.mrb[7].mxu0 }
 0x404   :  { %1474 = vtanh.f32 %v340_v50  ;;  %v1204_v53 = vmul.f32 -1.442695, %v340_v50 }
 0x406   :  { %1476 = vpow2.f32 %v1204_v53 }
 0x40e   :  { %v1475_v52 = vpop.eup %1474 }
 0x40f   :  { %355 = vrot.lane.b32.xlu0 %v1475_v52, %s1633_s29 }
 0x410   :  { %v1477_v54 = vpop.eup %1476 }
 0x411   :  { %v344_v55 = vadd.f32 1.0, %v1477_v54 }
 0x413   :  { %1478 = vrcp.f32 %v344_v55 }
 0x41d   :  { %v1479_v56 = vpop.eup %1478 }
 0x41e   :  { %v353_v60 = vmul.f32 %v1479_v56, %v351_v59 }
 0x481   :  { %v356_v57 = vpop.permute.xlu0 %355 }
 0x482   :  { %v358_v58 = vmul.f32 %v1479_v56, %v356_v57 }
 0x484   :  { %360 = vrot.lane.b32.xlu0 %v358_v58, %s1633_s29 }
 0x4f6   :  { %v361_v61 = vpop.permute.xlu0 %360 }
 0x4f7   :  { %v363_v62 = vadd.f32 %v361_v61, %v353_v60 }
 0x4f9   :  { %1480 = vtanh.f32 %v363_v62 }
 0x503   :  { %v1481_v63 = vpop.eup %1480 }
 0x504   :  { %366 = vrot.lane.b32.xlu1 %v1481_v63, %s1633_s29 }
 0x508   :  { %371 = vrot.lane.b32.xlu1 %v363_v62, %s1634_s2 }
 0x576   :  { %v367_v3 = vpop.permute.xlu1 %366 }
 0x577   :  { %v369_v4 = vmul.f32 %v1479_v56, %v367_v3 }
 0x579   :  { %376 = vrot.lane.b32.xlu0 %v369_v4, %s1625_s25 }
 0x57a   :  { %v372_v9 = vpop.permute.xlu1 %371 }
 0x57b   :  { %374 = vst.msk [vmem:[#allocation3] sm:$0x3] %vm60_vm0, %v372_v9 }
 0x582   :  { %v480_v10 = vld [vmem:[#allocation3] sm:$0x3] }
 0x583   :  { %482 = vrot.lane.b32.xlu1 %v480_v10, %s1633_s29 }
 0x5eb   :  { %v377_v11 = vpop.permute.xlu0 %376 }
 0x5ec   :  { %379 = vst.msk [vmem:[#allocation2] sm:$0x3] %vm60_vm0, %v377_v11  ;;  %381 = vst.msk [vmem:[#allocation10 + $0x2] sm:$0x3] %vm60_vm0, %v377_v11 }
 0x5f3   :  { %v384_v12 = vld [vmem:[#allocation2] sm:$0x3] }
 0x5f4   :  { %v385_v13 = vpack.c.bf16 %v384_v12, %v384_v12 }
 0x5f5   :  { %v483_v33 = vpop.permute.xlu1 %482 }
 0x5f6   :  { %1332 = vmatmul.mubr.msk.bf16.vlgmr.msra.gmra.mrb[8].mxu1 %vm91_vm2, %v385_v13 }
 0x5f7   :  { %1336 = vmatpush3.bf16.msra.mxu1 %v1723_v5  ;;  %1343 = vmatprep.mubr.msk.bf16.mxu1 %vm1632_vm1, %v1631_v0 }
 0x5f8   :  { %1337 = vmatprep.subr.bf16.mxu1 %v1631_v0 }
 0x5fb   :  { %1338 = vmatpush3.bf16.msra.mxu1 %v1730_v6 }
 0x5fc   :  { %1339 = vmatprep.subr.bf16.mxu1 %v1631_v0 }
 0x5ff   :  { %1340 = vmatpush3.bf16.msra.mxu1 %v1736_v7 }
 0x600   :  { %1341 = vmatprep.subr.bf16.mxu1 %v1631_v0 }
 0x603   :  { %1342 = vmatpush3.bf16.msra.mxu1 %v1740_v8 }
 0x604   :  { %1367 = vmatprep.subr.bf16.mxu1 %v1631_v0 }
 0x606   :  { %1344 = vmatmul.mubr.msk.bf16.vlgmr.msra.gmra.mrb[12].mxu1 %vm159_vm3, %v383_v15 }
 0x607   :  { %1368 = vmatpush3.bf16.msra.mxu1 %v1714_v1  ;;  %1371 = vmatprep.mubr.msk.bf16.mxu1 %vm1632_vm1, %v1631_v0 }
 0x608   :  { %1369 = vmatprep.subr.bf16.mxu1 %v1631_v0 }
 0x60b   :  { %1370 = vmatpush3.bf16.msra.mxu1 %v1716_v2 }
 0x60c   :  { %1375 = vmatprep.subr.bf16.mxu1 %v1631_v0 }
 0x6c9   :  { %v423_v16 = vpop.f32.mrb[8].mxu1 }
 0x6ca   :  { %v1333_v17 = vpop.f32.mrb[9].mxu1 }
 0x6cb   :  { %v426_v18 = vpop.f32.mrb[10].mxu1 }
 0x6cc   :  { %v1334_v19 = vpop.f32.mrb[11].mxu1 }
 0x6cd   :  { %v647_v19 = vld [vmem:[#allocation4 + $0x4] sm:$0x1] }
 0x6d9   :  { %v466_v20 = vpop.f32.mrb[12].mxu1 }
 0x6da   :  { %v467_v21 = vadd.f32 %v466_v20, %v423_v16  ;;  %v1345_v22 = vpop.f32.mrb[13].mxu1 }
 0x6db   :  { %v469_v23 = vpop.f32.mrb[14].mxu1 }
 0x6dc   :  { %v472_v24 = vadd.f32 %v1755_v14, %v467_v21  ;;  %v1346_v25 = vpop.f32.mrb[15].mxu1 }
 0x6de   :  { %1482 = vtanh.f32 %v472_v24  ;;  %v1207_v27 = vmul.f32 -1.442695, %v472_v24 }
 0x6e0   :  { %1484 = vpow2.f32 %v1207_v27 }
 0x6e8   :  { %v1483_v26 = vpop.eup %1482 }
 0x6e9   :  { %487 = vrot.lane.b32.xlu0 %v1483_v26, %s1633_s29 }
 0x6ea   :  { %v1485_v28 = vpop.eup %1484 }
 0x6eb   :  { %v476_v29 = vadd.f32 1.0, %v1485_v28 }
 0x6ed   :  { %1486 = vrcp.f32 %v476_v29 }
 0x6f7   :  { %v1487_v30 = vpop.eup %1486 }
 0x6f8   :  { %v485_v34 = vmul.f32 %v1487_v30, %v483_v33 }
 0x75b   :  { %v488_v31 = vpop.permute.xlu0 %487 }
 0x75c   :  { %v490_v32 = vmul.f32 %v1487_v30, %v488_v31 }
 0x75e   :  { %492 = vrot.lane.b32.xlu0 %v490_v32, %s1633_s29 }
 0x7d0   :  { %v493_v35 = vpop.permute.xlu0 %492 }
 0x7d1   :  { %v495_v36 = vadd.f32 %v493_v35, %v485_v34 }
 0x7d3   :  { %1488 = vtanh.f32 %v495_v36 }
 0x7dd   :  { %v1489_v37 = vpop.eup %1488 }
 0x7de   :  { %498 = vrot.lane.b32.xlu1 %v1489_v37, %s1633_s29 }
 0x7e2   :  { %503 = vrot.lane.b32.xlu1 %v495_v36, %s1634_s2 }
 0x850   :  { %v499_v38 = vpop.permute.xlu1 %498 }
 0x851   :  { %v501_v39 = vmul.f32 %v1487_v30, %v499_v38 }
 0x853   :  { %508 = vrot.lane.b32.xlu0 %v501_v39, %s1625_s25 }
 0x854   :  { %v504_v40 = vpop.permute.xlu1 %503 }
 0x855   :  { %506 = vst.msk [vmem:[#allocation3] sm:$0x3] %vm60_vm0, %v504_v40 }
 0x85c   :  { %v612_v41 = vld [vmem:[#allocation3] sm:$0x3] }
 0x85d   :  { %614 = vrot.lane.b32.xlu1 %v612_v41, %s1633_s29 }
 0x8c5   :  { %v509_v42 = vpop.permute.xlu0 %508 }
 0x8c6   :  { %511 = vst.msk [vmem:[#allocation2] sm:$0x3] %vm60_vm0, %v509_v42  ;;  %513 = vst.msk [vmem:[#allocation10 + $0x4] sm:$0x3] %vm60_vm0, %v509_v42 }
 0x8cd   :  { %v516_v43 = vld [vmem:[#allocation2] sm:$0x3] }
 0x8ce   :  { %v517_v44 = vpack.c.bf16 %v516_v43, %v516_v43 }
 0x8cf   :  { %v615_v63 = vpop.permute.xlu1 %614 }
 0x8d0   :  { %1352 = vmatmul.mubr.msk.bf16.vlgmr.msra.gmra.mrb[8].mxu0 %vm91_vm2, %v517_v44 }
 0x8d1   :  { %1356 = vmatpush3.bf16.msra.mxu0 %v1723_v5  ;;  %1363 = vmatprep.mubr.msk.bf16.mxu0 %vm1632_vm1, %v1631_v0 }
 0x8d2   :  { %1357 = vmatprep.subr.bf16.mxu0 %v1631_v0 }
 0x8d5   :  { %1358 = vmatpush3.bf16.msra.mxu0 %v1730_v6 }
 0x8d6   :  { %1359 = vmatprep.subr.bf16.mxu0 %v1631_v0 }
 0x8d9   :  { %1360 = vmatpush3.bf16.msra.mxu0 %v1736_v7 }
 0x8da   :  { %1361 = vmatprep.subr.bf16.mxu0 %v1631_v0 }
 0x8dd   :  { %1362 = vmatpush3.bf16.msra.mxu0 %v1740_v8 }
 0x8de   :  { %1387 = vmatprep.subr.bf16.mxu0 %v1631_v0 }
 0x8e0   :  { %1364 = vmatmul.mubr.msk.bf16.vlgmr.msra.gmra.mrb[12].mxu0 %vm159_vm3, %v515_v45 }
 0x8e1   :  { %1388 = vmatpush3.bf16.msra.mxu0 %v1714_v1  ;;  %1391 = vmatprep.mubr.msk.bf16.mxu0 %vm1632_vm1, %v1631_v0 }
 0x8e2   :  { %1389 = vmatprep.subr.bf16.mxu0 %v1631_v0 }
 0x8e5   :  { %1390 = vmatpush3.bf16.msra.mxu0 %v1716_v2 }
 0x8e6   :  { %1395 = vmatprep.subr.bf16.mxu0 %v1631_v0 }
 0x9a3   :  { %v555_v46 = vpop.f32.mrb[8].mxu0 }
 0x9a4   :  { %v1353_v47 = vpop.f32.mrb[9].mxu0 }
 0x9a5   :  { %v558_v48 = vpop.f32.mrb[10].mxu0 }
 0x9a6   :  { %v1354_v49 = vpop.f32.mrb[11].mxu0 }
 0x9a7   :  { %v779_v49 = vld [vmem:[#allocation4 + $0x5] sm:$0x1] }
 0x9b3   :  { %v598_v50 = vpop.f32.mrb[12].mxu0 }
 0x9b4   :  { %v599_v51 = vadd.f32 %v598_v50, %v555_v46  ;;  %v1365_v52 = vpop.f32.mrb[13].mxu0 }
 0x9b5   :  { %v601_v53 = vpop.f32.mrb[14].mxu0 }
 0x9b6   :  { %v604_v54 = vadd.f32 %v1755_v14, %v599_v51  ;;  %v1366_v55 = vpop.f32.mrb[15].mxu0 }
 0x9b8   :  { %1490 = vtanh.f32 %v604_v54  ;;  %v1210_v57 = vmul.f32 -1.442695, %v604_v54 }
 0x9ba   :  { %1492 = vpow2.f32 %v1210_v57 }
 0x9c2   :  { %v1491_v56 = vpop.eup %1490 }
 0x9c3   :  { %619 = vrot.lane.b32.xlu0 %v1491_v56, %s1633_s29 }
 0x9c4   :  { %v1493_v58 = vpop.eup %1492 }
 0x9c5   :  { %v608_v59 = vadd.f32 1.0, %v1493_v58 }
 0x9c7   :  { %1494 = vrcp.f32 %v608_v59 }
 0x9d1   :  { %v1495_v60 = vpop.eup %1494 }
 0x9d2   :  { %v617_v3 = vmul.f32 %v1495_v60, %v615_v63 }
 0xa35   :  { %v620_v61 = vpop.permute.xlu0 %619 }
 0xa36   :  { %v622_v62 = vmul.f32 %v1495_v60, %v620_v61 }
 0xa38   :  { %624 = vrot.lane.b32.xlu0 %v622_v62, %s1633_s29 }
 0xaaa   :  { %v625_v4 = vpop.permute.xlu0 %624 }
 0xaab   :  { %v627_v9 = vadd.f32 %v625_v4, %v617_v3 }
 0xaad   :  { %1496 = vtanh.f32 %v627_v9 }
 0xab7   :  { %v1497_v10 = vpop.eup %1496 }
 0xab8   :  { %630 = vrot.lane.b32.xlu1 %v1497_v10, %s1633_s29 }
 0xabc   :  { %635 = vrot.lane.b32.xlu1 %v627_v9, %s1634_s2 }
 0xb2a   :  { %v631_v11 = vpop.permute.xlu1 %630 }
 0xb2b   :  { %v633_v12 = vmul.f32 %v1495_v60, %v631_v11 }
 0xb2d   :  { %640 = vrot.lane.b32.xlu0 %v633_v12, %s1625_s25 }
 0xb2e   :  { %v636_v13 = vpop.permute.xlu1 %635 }
 0xb2f   :  { %638 = vst.msk [vmem:[#allocation3] sm:$0x3] %vm60_vm0, %v636_v13 }
 0xb36   :  { %v744_v15 = vld [vmem:[#allocation3] sm:$0x3] }
 0xb37   :  { %746 = vrot.lane.b32.xlu1 %v744_v15, %s1633_s29 }
 0xb9f   :  { %v641_v16 = vpop.permute.xlu0 %640 }
 0xba0   :  { %643 = vst.msk [vmem:[#allocation2] sm:$0x3] %vm60_vm0, %v641_v16  ;;  %645 = vst.msk [vmem:[#allocation10 + $0x6] sm:$0x3] %vm60_vm0, %v641_v16 }
 0xba7   :  { %v648_v17 = vld [vmem:[#allocation2] sm:$0x3] }
 0xba8   :  { %v649_v18 = vpack.c.bf16 %v648_v17, %v648_v17 }
 0xba9   :  { %v747_v37 = vpop.permute.xlu1 %746 }
 0xbaa   :  { %1372 = vmatmul.mubr.msk.bf16.vlgmr.msra.gmra.mrb[16].mxu1 %vm91_vm2, %v649_v18 }
 0xbab   :  { %1376 = vmatpush3.bf16.msra.mxu1 %v1723_v5  ;;  %1383 = vmatprep.mubr.msk.bf16.mxu1 %vm1632_vm1, %v1631_v0 }
 0xbac   :  { %1377 = vmatprep.subr.bf16.mxu1 %v1631_v0 }
 0xbaf   :  { %1378 = vmatpush3.bf16.msra.mxu1 %v1730_v6 }
 0xbb0   :  { %1379 = vmatprep.subr.bf16.mxu1 %v1631_v0 }
 0xbb3   :  { %1380 = vmatpush3.bf16.msra.mxu1 %v1736_v7 }
 0xbb4   :  { %1381 = vmatprep.subr.bf16.mxu1 %v1631_v0 }
 0xbb7   :  { %1382 = vmatpush3.bf16.msra.mxu1 %v1740_v8 }
 0xbb8   :  { %1407 = vmatprep.subr.bf16.mxu1 %v1631_v0 }
 0xbba   :  { %1384 = vmatmul.mubr.msk.bf16.vlgmr.msra.gmra.mrb[20].mxu1 %vm159_vm3, %v647_v19 }
 0xbbb   :  { %1408 = vmatpush3.bf16.msra.mxu1 %v1714_v1  ;;  %1411 = vmatprep.mubr.msk.bf16.mxu1 %vm1632_vm1, %v1631_v0 }
 0xbbc   :  { %1409 = vmatprep.subr.bf16.mxu1 %v1631_v0 }
 0xbbf   :  { %1410 = vmatpush3.bf16.msra.mxu1 %v1716_v2 }
 0xbc0   :  { %1415 = vmatprep.subr.bf16.mxu1 %v1631_v0 }
 0xc7d   :  { %v687_v20 = vpop.f32.mrb[16].mxu1 }
 0xc7e   :  { %v1373_v21 = vpop.f32.mrb[17].mxu1 }
 0xc7f   :  { %v690_v22 = vpop.f32.mrb[18].mxu1  ;;  %v911_v21 = vld [vmem:[#allocation4 + $0x6] sm:$0x1] }
 0xc80   :  { %v1374_v23 = vpop.f32.mrb[19].mxu1 }
 0xc8d   :  { %v730_v24 = vpop.f32.mrb[20].mxu1 }
 0xc8e   :  { %v731_v25 = vadd.f32 %v730_v24, %v687_v20  ;;  %v1385_v26 = vpop.f32.mrb[21].mxu1 }
 0xc8f   :  { %v733_v27 = vpop.f32.mrb[22].mxu1 }
 0xc90   :  { %v736_v28 = vadd.f32 %v1755_v14, %v731_v25  ;;  %v1386_v29 = vpop.f32.mrb[23].mxu1 }
 0xc92   :  { %1498 = vtanh.f32 %v736_v28  ;;  %v1213_v31 = vmul.f32 -1.442695, %v736_v28 }
 0xc94   :  { %1500 = vpow2.f32 %v1213_v31 }
 0xc9c   :  { %v1499_v30 = vpop.eup %1498 }
 0xc9d   :  { %751 = vrot.lane.b32.xlu0 %v1499_v30, %s1633_s29 }
 0xc9e   :  { %v1501_v32 = vpop.eup %1500 }
 0xc9f   :  { %v740_v33 = vadd.f32 1.0, %v1501_v32 }
 0xca1   :  { %1502 = vrcp.f32 %v740_v33 }
 0xcab   :  { %v1503_v34 = vpop.eup %1502 }
 0xcac   :  { %v749_v38 = vmul.f32 %v1503_v34, %v747_v37 }
 0xd0f   :  { %v752_v35 = vpop.permute.xlu0 %751 }
 0xd10   :  { %v754_v36 = vmul.f32 %v1503_v34, %v752_v35 }
 0xd12   :  { %756 = vrot.lane.b32.xlu0 %v754_v36, %s1633_s29 }
 0xd84   :  { %v757_v39 = vpop.permute.xlu0 %756 }
 0xd85   :  { %v759_v40 = vadd.f32 %v757_v39, %v749_v38 }
 0xd87   :  { %1504 = vtanh.f32 %v759_v40 }
 0xd91   :  { %v1505_v41 = vpop.eup %1504 }
 0xd92   :  { %762 = vrot.lane.b32.xlu1 %v1505_v41, %s1633_s29 }
 0xd96   :  { %767 = vrot.lane.b32.xlu1 %v759_v40, %s1634_s2 }
 0xe04   :  { %v763_v42 = vpop.permute.xlu1 %762 }
 0xe05   :  { %v765_v43 = vmul.f32 %v1503_v34, %v763_v42 }
 0xe07   :  { %772 = vrot.lane.b32.xlu0 %v765_v43, %s1625_s25 }
 0xe08   :  { %v768_v44 = vpop.permute.xlu1 %767 }
 0xe09   :  { %770 = vst.msk [vmem:[#allocation3] sm:$0x3] %vm60_vm0, %v768_v44 }
 0xe10   :  { %v876_v45 = vld [vmem:[#allocation3] sm:$0x3] }
 0xe11   :  { %878 = vrot.lane.b32.xlu1 %v876_v45, %s1633_s29 }
 0xe79   :  { %v773_v46 = vpop.permute.xlu0 %772 }
 0xe7a   :  { %775 = vst.msk [vmem:[#allocation2] sm:$0x3] %vm60_vm0, %v773_v46  ;;  %777 = vst.msk [vmem:[#allocation10 + $0x8] sm:$0x3] %vm60_vm0, %v773_v46 }
 0xe81   :  { %v780_v47 = vld [vmem:[#allocation2] sm:$0x3] }
 0xe82   :  { %v781_v48 = vpack.c.bf16 %v780_v47, %v780_v47 }
 0xe83   :  { %v879_v4 = vpop.permute.xlu1 %878 }
 0xe84   :  { %1392 = vmatmul.mubr.msk.bf16.vlgmr.msra.gmra.mrb[16].mxu0 %vm91_vm2, %v781_v48 }
 0xe85   :  { %1396 = vmatpush3.bf16.msra.mxu0 %v1723_v5  ;;  %1403 = vmatprep.mubr.msk.bf16.mxu0 %vm1632_vm1, %v1631_v0 }
 0xe86   :  { %1397 = vmatprep.subr.bf16.mxu0 %v1631_v0 }
 0xe89   :  { %1398 = vmatpush3.bf16.msra.mxu0 %v1730_v6 }
 0xe8a   :  { %1399 = vmatprep.subr.bf16.mxu0 %v1631_v0 }
 0xe8d   :  { %1400 = vmatpush3.bf16.msra.mxu0 %v1736_v7 }
 0xe8e   :  { %1401 = vmatprep.subr.bf16.mxu0 %v1631_v0 }
 0xe91   :  { %1402 = vmatpush3.bf16.msra.mxu0 %v1740_v8 }
 0xe92   :  { %1427 = vmatprep.subr.bf16.mxu0 %v1631_v0 }
 0xe94   :  { %1404 = vmatmul.mubr.msk.bf16.vlgmr.msra.gmra.mrb[20].mxu0 %vm159_vm3, %v779_v49 }
 0xe95   :  { %1428 = vmatpush3.bf16.msra.mxu0 %v1714_v1  ;;  %1431 = vmatprep.mubr.msk.bf16.mxu0 %vm1632_vm1, %v1631_v0 }
 0xe96   :  { %1429 = vmatprep.subr.bf16.mxu0 %v1631_v0 }
 0xe99   :  { %1430 = vmatpush3.bf16.msra.mxu0 %v1716_v2 }
 0xe9a   :  { %1435 = vmatprep.subr.bf16.mxu0 %v1631_v0 }
 0xf57   :  { %v819_v50 = vpop.f32.mrb[16].mxu0 }
 0xf58   :  { %v1393_v51 = vpop.f32.mrb[17].mxu0 }
 0xf59   :  { %v822_v52 = vpop.f32.mrb[18].mxu0  ;;  %v1043_v51 = vld [vmem:[#allocation4 + $0x7] sm:$0x1] }
 0xf5a   :  { %v1394_v53 = vpop.f32.mrb[19].mxu0 }
 0xf67   :  { %v862_v54 = vpop.f32.mrb[20].mxu0 }
 0xf68   :  { %v863_v55 = vadd.f32 %v862_v54, %v819_v50  ;;  %v1405_v56 = vpop.f32.mrb[21].mxu0 }
 0xf69   :  { %v865_v57 = vpop.f32.mrb[22].mxu0 }
 0xf6a   :  { %v868_v58 = vadd.f32 %v1755_v14, %v863_v55  ;;  %v1406_v1 = vpop.f32.mrb[23].mxu0 }
 0xf6c   :  { %1506 = vtanh.f32 %v868_v58  ;;  %v1216_v60 = vmul.f32 -1.442695, %v868_v58 }
 0xf6e   :  { %1508 = vpow2.f32 %v1216_v60 }
 0xf76   :  { %v1507_v59 = vpop.eup %1506 }
 0xf77   :  { %883 = vrot.lane.b32.xlu0 %v1507_v59, %s1633_s29 }
 0xf78   :  { %v1509_v2 = vpop.eup %1508 }
 0xf79   :  { %v872_v61 = vadd.f32 1.0, %v1509_v2 }
 0xf7b   :  { %1510 = vrcp.f32 %v872_v61 }
 0xf85   :  { %v1511_v62 = vpop.eup %1510 }
 0xf86   :  { %v881_v9 = vmul.f32 %v1511_v62, %v879_v4 }
 0xfe9   :  { %v884_v63 = vpop.permute.xlu0 %883 }
 0xfea   :  { %v886_v3 = vmul.f32 %v1511_v62, %v884_v63 }
 0xfec   :  { %888 = vrot.lane.b32.xlu0 %v886_v3, %s1633_s29 }
0x105e   :  { %v889_v10 = vpop.permute.xlu0 %888 }
0x105f   :  { %v891_v11 = vadd.f32 %v889_v10, %v881_v9 }
0x1061   :  { %1512 = vtanh.f32 %v891_v11 }
0x106b   :  { %v1513_v12 = vpop.eup %1512 }
0x106c   :  { %894 = vrot.lane.b32.xlu1 %v1513_v12, %s1633_s29 }
0x1070   :  { %899 = vrot.lane.b32.xlu1 %v891_v11, %s1634_s2 }
0x10de   :  { %v895_v13 = vpop.permute.xlu1 %894 }
0x10df   :  { %v897_v15 = vmul.f32 %v1511_v62, %v895_v13 }
0x10e1   :  { %904 = vrot.lane.b32.xlu0 %v897_v15, %s1625_s25 }
0x10e2   :  { %v900_v16 = vpop.permute.xlu1 %899 }
0x10e3   :  { %902 = vst.msk [vmem:[#allocation3] sm:$0x3] %vm60_vm0, %v900_v16 }
0x10ea   :  { %v1008_v17 = vld [vmem:[#allocation3] sm:$0x3] }
0x10eb   :  { %1010 = vrot.lane.b32.xlu1 %v1008_v17, %s1633_s29 }
0x1153   :  { %v905_v18 = vpop.permute.xlu0 %904 }
0x1154   :  { %907 = vst.msk [vmem:[#allocation2] sm:$0x3] %vm60_vm0, %v905_v18  ;;  %909 = vst.msk [vmem:[#allocation10 + $0xa] sm:$0x3] %vm60_vm0, %v905_v18 }
0x115b   :  { %v912_v19 = vld [vmem:[#allocation2] sm:$0x3] }
0x115c   :  { %v913_v20 = vpack.c.bf16 %v912_v19, %v912_v19 }
0x115d   :  { %v1011_v39 = vpop.permute.xlu1 %1010 }
0x115e   :  { %1412 = vmatmul.mubr.msk.bf16.vlgmr.msra.gmra.mrb[24].mxu1 %vm91_vm2, %v913_v20 }
0x115f   :  { %1416 = vmatpush3.bf16.msra.mxu1 %v1723_v5  ;;  %1423 = vmatprep.mubr.msk.bf16.mxu1 %vm1632_vm1, %v1631_v0 }
0x1160   :  { %1417 = vmatprep.subr.bf16.mxu1 %v1631_v0 }
0x1163   :  { %1418 = vmatpush3.bf16.msra.mxu1 %v1730_v6 }
0x1164   :  { %1419 = vmatprep.subr.bf16.mxu1 %v1631_v0 }
0x1167   :  { %1420 = vmatpush3.bf16.msra.mxu1 %v1736_v7 }
0x1168   :  { %1421 = vmatprep.subr.bf16.mxu1 %v1631_v0 }
0x116b   :  { %1422 = vmatpush3.bf16.msra.mxu1 %v1740_v8 }
0x116e   :  { %1424 = vmatmul.mubr.msk.bf16.vlgmr.msra.gmra.mrb[28].mxu1 %vm159_vm3, %v911_v21 }
0x1231   :  { %v951_v22 = vpop.f32.mrb[24].mxu1 }
0x1232   :  { %v1413_v23 = vpop.f32.mrb[25].mxu1 }
0x1233   :  { %v954_v24 = vpop.f32.mrb[26].mxu1 }
0x1234   :  { %v1414_v25 = vpop.f32.mrb[27].mxu1 }
0x1241   :  { %v994_v26 = vpop.f32.mrb[28].mxu1 }
0x1242   :  { %v995_v27 = vadd.f32 %v994_v26, %v951_v22  ;;  %v1425_v28 = vpop.f32.mrb[29].mxu1 }
0x1243   :  { %v997_v29 = vpop.f32.mrb[30].mxu1 }
0x1244   :  { %v1000_v30 = vadd.f32 %v1755_v14, %v995_v27  ;;  %v1426_v31 = vpop.f32.mrb[31].mxu1 }
0x1246   :  { %1514 = vtanh.f32 %v1000_v30  ;;  %v1219_v33 = vmul.f32 -1.442695, %v1000_v30 }
0x1248   :  { %1516 = vpow2.f32 %v1219_v33 }
0x1250   :  { %v1515_v32 = vpop.eup %1514 }
0x1251   :  { %1015 = vrot.lane.b32.xlu0 %v1515_v32, %s1633_s29 }
0x1252   :  { %v1517_v34 = vpop.eup %1516 }
0x1253   :  { %v1004_v35 = vadd.f32 1.0, %v1517_v34 }
0x1255   :  { %1518 = vrcp.f32 %v1004_v35 }
0x125f   :  { %v1519_v36 = vpop.eup %1518 }
0x1260   :  { %v1013_v40 = vmul.f32 %v1519_v36, %v1011_v39 }
0x12c3   :  { %v1016_v37 = vpop.permute.xlu0 %1015 }
0x12c4   :  { %v1018_v38 = vmul.f32 %v1519_v36, %v1016_v37 }
0x12c6   :  { %1020 = vrot.lane.b32.xlu0 %v1018_v38, %s1633_s29 }
0x1338   :  { %v1021_v41 = vpop.permute.xlu0 %1020 }
0x1339   :  { %v1023_v42 = vadd.f32 %v1021_v41, %v1013_v40 }
0x133b   :  { %1520 = vtanh.f32 %v1023_v42 }
0x1345   :  { %v1521_v43 = vpop.eup %1520 }
0x1346   :  { %1026 = vrot.lane.b32.xlu1 %v1521_v43, %s1633_s29 }
0x134a   :  { %1031 = vrot.lane.b32.xlu1 %v1023_v42, %s1634_s2 }
0x13b8   :  { %v1027_v44 = vpop.permute.xlu1 %1026 }
0x13b9   :  { %v1029_v45 = vmul.f32 %v1519_v36, %v1027_v44 }
0x13bb   :  { %1036 = vrot.lane.b32.xlu0 %v1029_v45, %s1625_s25 }
0x13bc   :  { %v1032_v46 = vpop.permute.xlu1 %1031 }
0x13bd   :  { %1034 = vst.msk [vmem:[#allocation3] sm:$0x3] %vm60_vm0, %v1032_v46 }
0x13c4   :  { %v1140_v47 = vld [vmem:[#allocation3] sm:$0x3] }
0x13c5   :  { %1142 = vrot.lane.b32.xlu1 %v1140_v47, %s1633_s29 }
0x142d   :  { %v1037_v48 = vpop.permute.xlu0 %1036 }
0x142e   :  { %1039 = vst.msk [vmem:[#allocation2] sm:$0x3] %vm60_vm0, %v1037_v48  ;;  %1041 = vst.msk [vmem:[#allocation10 + $0xc] sm:$0x3] %vm60_vm0, %v1037_v48 }
0x1435   :  { %v1044_v49 = vld [vmem:[#allocation2] sm:$0x3] }
0x1436   :  { %v1045_v50 = vpack.c.bf16 %v1044_v49, %v1044_v49 }
0x1437   :  { %v1143_v62 = vpop.permute.xlu1 %1142 }
0x1438   :  { %1432 = vmatmul.mubr.msk.bf16.vlgmr.msra.gmra.mrb[24].mxu0 %vm91_vm2, %v1045_v50 }
0x1439   :  { %1436 = vmatpush3.bf16.msra.mxu0 %v1723_v5  ;;  %1443 = vmatprep.mubr.msk.bf16.mxu0 %vm1632_vm1, %v1631_v0 }
0x143a   :  { %1437 = vmatprep.subr.bf16.mxu0 %v1631_v0 }
0x143d   :  { %1438 = vmatpush3.bf16.msra.mxu0 %v1730_v6 }
0x143e   :  { %1439 = vmatprep.subr.bf16.mxu0 %v1631_v0 }
0x1441   :  { %1440 = vmatpush3.bf16.msra.mxu0 %v1736_v7 }
0x1442   :  { %1441 = vmatprep.subr.bf16.mxu0 %v1631_v0 }
0x1445   :  { %1442 = vmatpush3.bf16.msra.mxu0 %v1740_v8 }
0x1448   :  { %1444 = vmatmul.mubr.msk.bf16.vlgmr.msra.gmra.mrb[28].mxu0 %vm159_vm3, %v1043_v51 }
0x150b   :  { %v1083_v52 = vpop.f32.mrb[24].mxu0 }
0x150c   :  { %v1433_v5 = vpop.f32.mrb[25].mxu0 }
0x150d   :  { %v1086_v53 = vpop.f32.mrb[26].mxu0 }
0x150e   :  { %v1434_v54 = vpop.f32.mrb[27].mxu0 }
0x151b   :  { %v1126_v55 = vpop.f32.mrb[28].mxu0 }
0x151c   :  { %v1127_v56 = vadd.f32 %v1126_v55, %v1083_v52  ;;  %v1445_v57 = vpop.f32.mrb[29].mxu0 }
0x151d   :  { %v1129_v58 = vpop.f32.mrb[30].mxu0 }
0x151e   :  { %v1132_v6 = vadd.f32 %v1755_v14, %v1127_v56  ;;  %v1446_v1 = vpop.f32.mrb[31].mxu0 }
0x1520   :  { %1522 = vtanh.f32 %v1132_v6  ;;  %v1222_v0 = vmul.f32 -1.442695, %v1132_v6 }
0x1522   :  { %1524 = vpow2.f32 %v1222_v0 }
0x152a   :  { %v1523_v7 = vpop.eup %1522 }
0x152b   :  { %1147 = vrot.lane.b32.xlu0 %v1523_v7, %s1633_s29 }
0x152c   :  { %v1525_v8 = vpop.eup %1524 }
0x152d   :  { %v1136_v59 = vadd.f32 1.0, %v1525_v8 }
0x152f   :  { %1526 = vrcp.f32 %v1136_v59 }
0x1539   :  { %v1527_v60 = vpop.eup %1526 }
0x153a   :  { %v1145_v63 = vmul.f32 %v1527_v60, %v1143_v62 }
0x159d   :  { %v1148_v2 = vpop.permute.xlu0 %1147 }
0x159e   :  { %v1150_v61 = vmul.f32 %v1527_v60, %v1148_v2 }
0x15a0   :  { %1152 = vrot.lane.b32.xlu0 %v1150_v61, %s1633_s29 }
0x1612   :  { %v1153_v3 = vpop.permute.xlu0 %1152 }
0x1613   :  { %v1155_v4 = vadd.f32 %v1153_v3, %v1145_v63 }
0x1615   :  { %1528 = vtanh.f32 %v1155_v4 }
0x161f   :  { %v1529_v14 = vpop.eup %1528 }
0x1620   :  { %1158 = vrot.lane.b32.xlu1 %v1529_v14, %s1633_s29 }
0x1624   :  { %1163 = vrot.lane.b32.xlu1 %v1155_v4, %s1634_s2 }
0x1692   :  { %v1159_v9 = vpop.permute.xlu1 %1158 }
0x1693   :  { %v1161_v10 = vmul.f32 %v1527_v60, %v1159_v9 }
0x1695   :  { %1168 = vrot.lane.b32.xlu0 %v1161_v10, %s1625_s25 }
0x1696   :  { %v1164_v11 = vpop.permute.xlu1 %1163 }
0x1697   :  { %1166 = vst.msk [vmem:[#allocation3] sm:$0x3] %vm60_vm0, %v1164_v11 }
0x1707   :  { %v1169_v12 = vpop.permute.xlu0 %1168 }
0x1708   :  { %1171 = vst.msk [vmem:[#allocation2] sm:$0x3] %vm60_vm0, %v1169_v12  ;;  %1173 = vst.msk [vmem:[#allocation10 + $0xe] sm:$0x3] %vm60_vm0, %v1169_v12 }
0x1709   :  { %1607 = shalt.err (!%p1604_p0)
}
0x170a   :  { %s1608_s8 = scalar_lea.hbm %s1967_s4, 256 }
0x170b   :  { %p1609_p1 = scmp.ne.s32.totalorder %s1967_s4, %s1608_s8  ;;  %p1612_p2 = scmp.lt.u32.totalorder %s1608_s8, %s1967_s4 }
0x170d   :  { %p1614_p3 = pnand %p1612_p2, %p1609_p1 }
0x170f   :  { %1617 = shalt.err (!%p1614_p3)
}
0x1710   :  { %s1636_s1 = smov 2  }
0x1711   :  { %1185 = dma.vmem_to_hbm [thread:$0]  %s1180_s5, 256, %s1967_s4, [#allocation6], %s1633_s29, %s1633_s29, %s1636_s1  }
0x1712   :  { %1622 = dma.done.wait [#allocation6], 256  }
0x1713   :  { %1623 = vsyncadd [#allocation6], 4294967040 }
0x1714   :  { %1189 = vsyncpa [#allocation5], 1 }
0x1715   :  { %1190 = vsyncpa [#allocation8], 1 }
0x1716   :  { %1191 = vsyncpa [#allocation6], 1 }

</bundles_post_ra>
